<compile_context>
chip_gen: v5e
topology: v5e:2x2
jax: 0.10.0
libtpu: 0.0.40
codegen_flags: <defaults>
</compile_context>

<pallas_src>
import numpy as np
import jax
import jax.numpy as jnp
from jax.experimental import pallas as pl
from jax.experimental.pallas import tpu as pltpu


def _round_up(x, m):
    return ((x + m - 1) // m) * m


def _vmem_capacity_bytes():
    try:
        cap = getattr(pltpu.get_tpu_info(), "vmem_capacity_bytes", None)
        if cap:
            return int(cap)
    except Exception:
        pass
    return 64 << 20          # conservative default (v7x per-TensorCore VMEM)


def _choose_batch_tile(batch, s_pad, l_pad, e_pad, v_pad, n_pad, c_pad, weight_bytes):
    """Batch tile sized from the full per-step VMEM working set; returns (tb, vmem_limit)."""
    vmem_cap = _vmem_capacity_bytes()
    # Sizing budget ~0.35*VMEM, requested scoped limit ~0.7*VMEM -> ~2x headroom for
    # compiler temporaries the estimate below does not count.
    budget = int(vmem_cap * 0.35) - 2 * weight_bytes   # resident weights are double-buffered
    per_row = (
        2 * s_pad * 4                # ids double buffer (int32)
        + s_pad * v_pad * 2          # one-hot gather operand (bf16)
        + s_pad * e_pad * 2          # gathered embeddings (bf16)
        + 2 * l_pad * e_pad * 2      # shifted emb slices live during the conv matmuls
        + 2 * l_pad * n_pad * 4      # f32 conv accumulator (+ one temporary)
        + 8 * n_pad * 4              # pooled / h_pool / tg / t / g / h_highway
        + 2 * c_pad * 4              # output double buffer
    )
    tb = max(8, budget // per_row)
    tb = min((tb // 8) * 8, 1024)
    b_pad8 = _round_up(max(batch, 1), 8)
    tb = min(tb, b_pad8)
    # Keep at least 2 grid steps so megacore (v7x) can split the batch axis over both TCs.
    if tb >= b_pad8:
        tb = max(8, _round_up(b_pad8 // 2, 8))
    return tb, int(vmem_cap * 0.7)


def _make_kernel(max_fsz, l_pad, e_pad, v_pad, n_pad, bank_slices):
    def kernel(ids_ref, table_ref, wc_ref, bc_ref,
               whgl_ref, bhgl_ref, wo_ref, bo_ref, out_ref):
        ids = ids_ref[...]                                    # (TB, S_pad) int32
        tb, s_pad = ids.shape

        # In-kernel embedding gather: one-hot ids @ resident table on the MXU.
        # TODO(synk): for large vocabularies a jnp.take / DMA gather would avoid the
        # (TB, S_pad, v_pad) one-hot operand; at resident-table sizes this is fine.
        onehot = (ids[:, :, None] ==
                  jax.lax.broadcasted_iota(jnp.int32, (tb, s_pad, v_pad), 2)
                  ).astype(jnp.bfloat16)
        emb = jax.lax.dot_general(
            onehot, table_ref[...],
            dimension_numbers=(((2,), (0,)), ((), ())),
            preferred_element_type=jnp.float32).astype(jnp.bfloat16)   # (TB, S_pad, E_pad)

        # "Conv" = max_fsz shifted MXU matmuls (K = E_pad) accumulated in f32.
        # No materialized im2col copy; narrower banks have zero weight blocks for k >= fsz.
        acc = jax.lax.dot_general(
            emb[:, 0:l_pad, :], wc_ref[0:e_pad, :],
            dimension_numbers=(((2,), (0,)), ((), ())),
            preferred_element_type=jnp.float32)               # (TB, L_pad, n_pad)
        for k in range(1, max_fsz):
            acc = acc + jax.lax.dot_general(
                emb[:, k:k + l_pad, :], wc_ref[k * e_pad:(k + 1) * e_pad, :],
                dimension_numbers=(((2,), (0,)), ((), ())),
                preferred_element_type=jnp.float32)

        # Per-bank time max-pool over static slices (no additive -inf mask), then
        # bias + ReLU (exact: bias is time-invariant and ReLU is monotone).
        parts, off = [], 0
        for nf, l_valid in bank_slices:
            parts.append(jnp.max(acc[:, :l_valid, off:off + nf], axis=1))
            off += nf
        if off < n_pad:                                       # zero filter-padding lanes
            parts.append(jnp.max(acc[:, :1, off:], axis=1))
        pooled = jnp.concatenate(parts, axis=-1)              # (TB, n_pad)
        h_pool = jnp.maximum(pooled + bc_ref[...], 0.0)

        # Fused highway gate + lin: one (n_pad, 2*n_pad) matmul, slice t / g out.
        tg = (jnp.dot(h_pool.astype(jnp.bfloat16), whgl_ref[...],
                      preferred_element_type=jnp.float32) + bhgl_ref[...])
        t = jax.nn.sigmoid(tg[:, :n_pad])
        g = jnp.maximum(tg[:, n_pad:], 0.0)
        h_highway = t * g + (1.0 - t) * h_pool

        # TODO(synk): dropout is inference-mode identity (model.eval()); no RNG mask.
        out_ref[...] = (jnp.dot(h_highway.astype(jnp.bfloat16), wo_ref[...],
                                preferred_element_type=jnp.float32)
                        + bo_ref[...])

    return kernel


def discriminator_cnn_forward(inp, params, filter_sizes, num_filters, num_classes):
    batch, seq_len = inp.shape
    vocab, emb_dim = params["embedding"].shape
    assert max(filter_sizes) <= seq_len, "filter size exceeds sequence length"

    n_total = sum(num_filters)
    max_fsz = max(filter_sizes)
    min_fsz = min(filter_sizes)

    n_unfold = seq_len - min_fsz + 1
    l_pad = _round_up(n_unfold, 8)             # sublane-aligned conv-output length
    s_pad = l_pad + max_fsz - 1                # padded time so every shifted window exists
    e_pad = _round_up(emb_dim, 128)            # lane-dense embeddings / MXU-dense K
    v_pad = _round_up(vocab + 1, 128)          # +1 guarantees a zero sentinel row
    n_pad = _round_up(n_total, 128)            # MXU-dense filter/highway width
    c_pad = _round_up(num_classes, 128)        # lane-dense output store

    # ---- one-time parameter fusion / padding (plain JAX, outside the kernel) ----
    table = jnp.pad(params["embedding"].astype(jnp.bfloat16),
                    ((0, v_pad - vocab), (0, e_pad - emb_dim)))      # (v_pad, e_pad)

    w_blocks, b_blocks = [], []
    for (w, b), fsz in zip(params["convs"], filter_sizes):
        nf = w.shape[-1]
        w_k = jnp.pad(w, ((0, max_fsz - fsz), (0, e_pad - emb_dim), (0, 0)))
        w_blocks.append(jnp.reshape(w_k, (max_fsz * e_pad, nf)))     # k-major rows
        b_blocks.append(b)
    w_conv = jnp.pad(jnp.concatenate(w_blocks, axis=1),
                     ((0, 0), (0, n_pad - n_total))).astype(jnp.bfloat16)
    b_conv = jnp.pad(jnp.concatenate(b_blocks, axis=1),
                     ((0, 0), (0, n_pad - n_total))).astype(jnp.float32)

    def _pad_nn(w):                                                  # (n,n) -> (n_pad,n_pad)
        return jnp.pad(w, ((0, n_pad - n_total), (0, n_pad - n_total)))

    w_hgl = jnp.concatenate([_pad_nn(params["hg_w"]), _pad_nn(params["hl_w"])],
                            axis=1).astype(jnp.bfloat16)             # (n_pad, 2*n_pad)
    b_hgl = jnp.concatenate(
        [jnp.pad(params["hg_b"], ((0, 0), (0, n_pad - n_total))),
         jnp.pad(params["hl_b"], ((0, 0), (0, n_pad - n_total)))],
        axis=1).astype(jnp.float32)                                  # (1, 2*n_pad)
    w_out = jnp.pad(params["out_w"],
                    ((0, n_pad - n_total), (0, c_pad - num_classes))).astype(jnp.bfloat16)
    b_out = jnp.pad(params["out_b"],
                    ((0, 0), (0, c_pad - num_classes))).astype(jnp.float32)

    weights = (table, w_conv, b_conv, w_hgl, b_hgl, w_out, b_out)
    weight_bytes = sum(int(a.size) * a.dtype.itemsize for a in weights)

    tb, vmem_limit = _choose_batch_tile(batch, s_pad, l_pad, e_pad, v_pad,
                                        n_pad, c_pad, weight_bytes)
    padded_b = max(_round_up(batch, tb), 2 * tb)   # >= 2 grid steps for megacore (v7x)

    # ids: int32, batch/time padded with the zero-embedding sentinel row (index == vocab).
    ids = jnp.pad(jnp.asarray(inp, jnp.int32),
                  ((0, padded_b - batch), (0, s_pad - seq_len)),
                  constant_values=vocab)

    bank_slices = tuple((nf, seq_len - fsz + 1)
                        for fsz, nf in zip(filter_sizes, num_filters))
    kernel = _make_kernel(max_fsz, l_pad, e_pad, v_pad, n_pad, bank_slices)

    grid = (padded_b // tb,)
    scores = pl.pallas_call(
        kernel,
        out_shape=jax.ShapeDtypeStruct((padded_b, c_pad), jnp.float32),
        grid=grid,
        in_specs=[
            pl.BlockSpec((tb, s_pad), lambda b: (b, 0)),             # ids: tiled over batch
            # Resident operands (constant index_map).  On v7x with large weights these
            # could use pipeline_mode=pl.Buffered(1) to skip double-buffering; the
            # fused weights here are a few hundred KB so it is left at the default.
            pl.BlockSpec(table.shape, lambda b: (0, 0)),
            pl.BlockSpec(w_conv.shape, lambda b: (0, 0)),
            pl.BlockSpec(b_conv.shape, lambda b: (0, 0)),
            pl.BlockSpec(w_hgl.shape, lambda b: (0, 0)),
            pl.BlockSpec(b_hgl.shape, lambda b: (0, 0)),
            pl.BlockSpec(w_out.shape, lambda b: (0, 0)),
            pl.BlockSpec(b_out.shape, lambda b: (0, 0)),
        ],
        out_specs=pl.BlockSpec((tb, c_pad), lambda b: (b, 0)),
        compiler_params=pltpu.CompilerParams(
            dimension_semantics=("parallel",),
            vmem_limit_bytes=vmem_limit),
    )(ids, *weights)

    return scores[:batch, :num_classes]


def reference_forward(emb, params, filter_sizes, num_filters):
    """Pure-JAX f32 reference mirroring the PyTorch forward (eval mode)."""
    batch, seq_len, _ = emb.shape
    pooled = []
    for (w, b), fsz in zip(params["convs"], filter_sizes):
        L = seq_len - fsz + 1
        acc = jnp.zeros((batch, L, w.shape[-1]), jnp.float32)
        for k in range(fsz):
            acc = acc + jnp.einsum("ble,en->bln", emb[:, k:k + L, :], w[k])
        acc = jnp.maximum(acc + b[None, :, :], 0.0)
        pooled.append(jnp.max(acc, axis=1))
    h_pool = jnp.concatenate(pooled, axis=-1)
    t = jax.nn.sigmoid(h_pool @ params["hg_w"] + params["hg_b"])
    g = jnp.maximum(h_pool @ params["hl_w"] + params["hl_b"], 0.0)
    h = t * g + (1.0 - t) * h_pool
    return h @ params["out_w"] + params["out_b"]


if __name__ == "__main__":
    # Small config consistent with the module's __init__.
    vocab_size = 50
    embedding_dim = 32
    filter_sizes = (2, 3)
    num_filters = (8, 8)
    num_classes = 2
    batch, seq_len = 2, 8
    n_total = sum(num_filters)

    key = jax.random.PRNGKey(0)
    keys = jax.random.split(key, 16)

    # Deterministic synthetic parameters (shapes match nn.Embedding / Conv2d / Linear).
    emb_table = 0.1 * jax.random.normal(keys[0], (vocab_size, embedding_dim), jnp.float32)

    convs = []
    for i, (fsz, nf) in enumerate(zip(filter_sizes, num_filters)):
        # PyTorch Conv2d weight (nf, 1, fsz, E) -> kernel layout (fsz, E, nf)
        w = 0.1 * jax.random.normal(keys[1 + i], (fsz, embedding_dim, nf), jnp.float32)
        b = 0.05 * jax.random.normal(keys[3 + i], (1, nf), jnp.float32)
        convs.append((w, b))

    params = {
        "embedding": emb_table,
        "convs": convs,
        # Linear weights stored transposed: (in, out)
        "hg_w": 0.1 * jax.random.normal(keys[5], (n_total, n_total), jnp.float32),
        "hg_b": 0.05 * jax.random.normal(keys[6], (1, n_total), jnp.float32),
        "hl_w": 0.1 * jax.random.normal(keys[7], (n_total, n_total), jnp.float32),
        "hl_b": 0.05 * jax.random.normal(keys[8], (1, n_total), jnp.float32),
        "out_w": 0.1 * jax.random.normal(keys[9], (n_total, num_classes), jnp.float32),
        "out_b": 0.05 * jax.random.normal(keys[10], (1, num_classes), jnp.float32),
    }

    # Inputs (target is unused by the forward pass, same as the PyTorch module).
    inp = jax.random.randint(keys[11], (batch, seq_len), 0, vocab_size)
    _target = jax.random.randint(keys[12], (batch,), 0, num_classes)  # unused

    scores = discriminator_cnn_forward(inp, params, filter_sizes, num_filters, num_classes)
    scores = jax.block_until_ready(scores)

    ref = reference_forward(emb_table[inp], params, filter_sizes, num_filters)
    # bf16 table/matmul inputs (f32 accumulation) vs. f32 reference -> relaxed tolerance.
    np.testing.assert_allclose(np.asarray(scores), np.asarray(ref), rtol=2e-2, atol=2e-2)

    print("KERNEL_OK")
</pallas_src>

<mosaic_0001>
module attributes {stable_mosaic.version = 11 : i64} {
  func.func @kernel(%arg0: i32, %arg1: memref<8x10xi32, #tpu.memory_space<vmem>>, %arg2: memref<128x128xbf16, #tpu.memory_space<vmem>>, %arg3: memref<384x128xbf16, #tpu.memory_space<vmem>>, %arg4: memref<1x128xf32, #tpu.memory_space<vmem>>, %arg5: memref<128x256xbf16, #tpu.memory_space<vmem>>, %arg6: memref<1x256xf32, #tpu.memory_space<vmem>>, %arg7: memref<128x128xbf16, #tpu.memory_space<vmem>>, %arg8: memref<1x128xf32, #tpu.memory_space<vmem>>, %arg9: memref<8x128xf32, #tpu.memory_space<vmem>>) attributes {dimension_semantics = [#tpu.dimension_semantics<parallel>], iteration_bounds = array<i64: 2>, scalar_prefetch = 0 : i64, scratch_operands = 0 : i64, tpu.core_type = #tpu.core_type<tc>, window_params = [{transform_indices = @transform_0, window_bounds = array<i64: 8, 10>}, {pipeline_mode = #tpu.pipeline_mode<synchronous>, transform_indices = @transform_1, window_bounds = array<i64: 128, 128>}, {pipeline_mode = #tpu.pipeline_mode<synchronous>, transform_indices = @transform_2, window_bounds = array<i64: 384, 128>}, {pipeline_mode = #tpu.pipeline_mode<synchronous>, transform_indices = @transform_3, window_bounds = array<i64: 1, 128>}, {pipeline_mode = #tpu.pipeline_mode<synchronous>, transform_indices = @transform_4, window_bounds = array<i64: 128, 256>}, {pipeline_mode = #tpu.pipeline_mode<synchronous>, transform_indices = @transform_5, window_bounds = array<i64: 1, 256>}, {pipeline_mode = #tpu.pipeline_mode<synchronous>, transform_indices = @transform_6, window_bounds = array<i64: 128, 128>}, {pipeline_mode = #tpu.pipeline_mode<synchronous>, transform_indices = @transform_7, window_bounds = array<i64: 1, 128>}, {transform_indices = @transform_8, window_bounds = array<i64: 8, 128>}]} {
    %c0 = arith.constant 0 : index
    %c0_0 = arith.constant 0 : index
    %0 = vector.load %arg1[%c0, %c0_0] : memref<8x10xi32, #tpu.memory_space<vmem>>, vector<8x10xi32>
    %1 = vector.shape_cast %0 : vector<8x10xi32> to vector<8x10x1xi32>
    %2 = tpu.iota {dimensions = array<i32: 2>} : vector<8x10x128xi32>
    %3 = vector.broadcast %1 : vector<8x10x1xi32> to vector<8x10x128xi32>
    %4 = arith.cmpi eq, %3, %2 : vector<8x10x128xi32>
    %5 = arith.extui %4 : vector<8x10x128xi1> to vector<8x10x128xi32>
    %6 = arith.sitofp %5 : vector<8x10x128xi32> to vector<8x10x128xf32>
    %7 = arith.truncf %6 : vector<8x10x128xf32> to vector<8x10x128xbf16>
    %c0_1 = arith.constant 0 : index
    %c0_2 = arith.constant 0 : index
    %8 = vector.load %arg2[%c0_1, %c0_2] : memref<128x128xbf16, #tpu.memory_space<vmem>>, vector<128x128xbf16>
    %cst = arith.constant dense<0.000000e+00> : vector<8x10x128xf32>
    %9 = tpu.matmul %7, %8, %cst {dimension_numbers = #tpu.dot_dimension_numbers<[2], [0], [0, 1], [1], [0, 0, 0, 1, 1, 1], [], []>} : vector<8x10x128xbf16>, vector<128x128xbf16>, vector<8x10x128xf32> -> vector<8x10x128xf32>
    %10 = arith.truncf %9 : vector<8x10x128xf32> to vector<8x10x128xbf16>
    %11 = vector.extract_strided_slice %10 {offsets = [0, 0, 0], sizes = [8, 8, 128], strides = [1, 1, 1]} : vector<8x10x128xbf16> to vector<8x8x128xbf16>
    %c0_3 = arith.constant 0 : index
    %c0_4 = arith.constant 0 : index
    %12 = vector.load %arg3[%c0_3, %c0_4] : memref<384x128xbf16, #tpu.memory_space<vmem>>, vector<128x128xbf16>
    %cst_5 = arith.constant dense<0.000000e+00> : vector<8x8x128xf32>
    %13 = tpu.matmul %11, %12, %cst_5 {dimension_numbers = #tpu.dot_dimension_numbers<[2], [0], [0, 1], [1], [0, 0, 0, 1, 1, 1], [], []>} : vector<8x8x128xbf16>, vector<128x128xbf16>, vector<8x8x128xf32> -> vector<8x8x128xf32>
    %14 = vector.extract_strided_slice %10 {offsets = [0, 1, 0], sizes = [8, 8, 128], strides = [1, 1, 1]} : vector<8x10x128xbf16> to vector<8x8x128xbf16>
    %c128 = arith.constant 128 : index
    %c0_6 = arith.constant 0 : index
    %15 = vector.load %arg3[%c128, %c0_6] : memref<384x128xbf16, #tpu.memory_space<vmem>>, vector<128x128xbf16>
    %cst_7 = arith.constant dense<0.000000e+00> : vector<8x8x128xf32>
    %16 = tpu.matmul %14, %15, %cst_7 {dimension_numbers = #tpu.dot_dimension_numbers<[2], [0], [0, 1], [1], [0, 0, 0, 1, 1, 1], [], []>} : vector<8x8x128xbf16>, vector<128x128xbf16>, vector<8x8x128xf32> -> vector<8x8x128xf32>
    %17 = arith.addf %13, %16 : vector<8x8x128xf32>
    %18 = vector.extract_strided_slice %10 {offsets = [0, 2, 0], sizes = [8, 8, 128], strides = [1, 1, 1]} : vector<8x10x128xbf16> to vector<8x8x128xbf16>
    %c256 = arith.constant 256 : index
    %c0_8 = arith.constant 0 : index
    %19 = vector.load %arg3[%c256, %c0_8] : memref<384x128xbf16, #tpu.memory_space<vmem>>, vector<128x128xbf16>
    %cst_9 = arith.constant dense<0.000000e+00> : vector<8x8x128xf32>
    %20 = tpu.matmul %18, %19, %cst_9 {dimension_numbers = #tpu.dot_dimension_numbers<[2], [0], [0, 1], [1], [0, 0, 0, 1, 1, 1], [], []>} : vector<8x8x128xbf16>, vector<128x128xbf16>, vector<8x8x128xf32> -> vector<8x8x128xf32>
    %21 = arith.addf %17, %20 : vector<8x8x128xf32>
    %22 = vector.extract_strided_slice %21 {offsets = [0, 0, 0], sizes = [8, 7, 8], strides = [1, 1, 1]} : vector<8x8x128xf32> to vector<8x7x8xf32>
    %cst_10 = arith.constant dense<0xFF800000> : vector<8x8xf32>
    %23 = vector.multi_reduction <maximumf>, %22, %cst_10 [1] : vector<8x7x8xf32> to vector<8x8xf32>
    %24 = vector.extract_strided_slice %21 {offsets = [0, 0, 8], sizes = [8, 6, 8], strides = [1, 1, 1]} : vector<8x8x128xf32> to vector<8x6x8xf32>
    %cst_11 = arith.constant dense<0xFF800000> : vector<8x8xf32>
    %25 = vector.multi_reduction <maximumf>, %24, %cst_11 [1] : vector<8x6x8xf32> to vector<8x8xf32>
    %26 = vector.extract_strided_slice %21 {offsets = [0, 0, 16], sizes = [8, 1, 112], strides = [1, 1, 1]} : vector<8x8x128xf32> to vector<8x1x112xf32>
    %cst_12 = arith.constant dense<0xFF800000> : vector<8x112xf32>
    %27 = vector.multi_reduction <maximumf>, %26, %cst_12 [1] : vector<8x1x112xf32> to vector<8x112xf32>
    %28 = tpu.concatenate %23, %25, %27 in 1 : vector<8x8xf32>, vector<8x8xf32>, vector<8x112xf32> -> vector<8x128xf32>
    %c0_13 = arith.constant 0 : index
    %c0_14 = arith.constant 0 : index
    %29 = vector.load %arg4[%c0_13, %c0_14] : memref<1x128xf32, #tpu.memory_space<vmem>>, vector<1x128xf32>
    %30 = vector.broadcast %29 : vector<1x128xf32> to vector<8x128xf32>
    %31 = arith.addf %28, %30 : vector<8x128xf32>
    %cst_15 = arith.constant 0.000000e+00 : f32
    %32 = vector.broadcast %cst_15 : f32 to vector<8x128xf32>
    %33 = arith.maximumf %31, %32 : vector<8x128xf32>
    %34 = arith.truncf %33 : vector<8x128xf32> to vector<8x128xbf16>
    %c0_16 = arith.constant 0 : index
    %c0_17 = arith.constant 0 : index
    %35 = vector.load %arg5[%c0_16, %c0_17] : memref<128x256xbf16, #tpu.memory_space<vmem>>, vector<128x256xbf16>
    %cst_18 = arith.constant dense<0.000000e+00> : vector<8x256xf32>
    %36 = tpu.matmul %34, %35, %cst_18 {dimension_numbers = #tpu.dot_dimension_numbers<[1], [0], [0], [1], [0, 0, 1, 1], [], []>} : vector<8x128xbf16>, vector<128x256xbf16>, vector<8x256xf32> -> vector<8x256xf32>
    %c0_19 = arith.constant 0 : index
    %c0_20 = arith.constant 0 : index
    %37 = vector.load %arg6[%c0_19, %c0_20] : memref<1x256xf32, #tpu.memory_space<vmem>>, vector<1x256xf32>
    %38 = vector.broadcast %37 : vector<1x256xf32> to vector<8x256xf32>
    %39 = arith.addf %36, %38 : vector<8x256xf32>
    %40 = vector.extract_strided_slice %39 {offsets = [0, 0], sizes = [8, 128], strides = [1, 1]} : vector<8x256xf32> to vector<8x128xf32>
    %41 = arith.negf %40 : vector<8x128xf32>
    %42 = math.exp %41 : vector<8x128xf32>
    %cst_21 = arith.constant 1.000000e+00 : f32
    %43 = vector.broadcast %cst_21 : f32 to vector<8x128xf32>
    %44 = arith.addf %43, %42 : vector<8x128xf32>
    %45 = arith.divf %43, %44 : vector<8x128xf32>
    %46 = vector.extract_strided_slice %39 {offsets = [0, 128], sizes = [8, 128], strides = [1, 1]} : vector<8x256xf32> to vector<8x128xf32>
    %cst_22 = arith.constant 0.000000e+00 : f32
    %47 = vector.broadcast %cst_22 : f32 to vector<8x128xf32>
    %48 = arith.maximumf %46, %47 : vector<8x128xf32>
    %49 = arith.mulf %45, %48 : vector<8x128xf32>
    %cst_23 = arith.constant 1.000000e+00 : f32
    %50 = vector.broadcast %cst_23 : f32 to vector<8x128xf32>
    %51 = arith.subf %50, %45 : vector<8x128xf32>
    %52 = arith.mulf %51, %33 : vector<8x128xf32>
    %53 = arith.addf %49, %52 : vector<8x128xf32>
    %54 = arith.truncf %53 : vector<8x128xf32> to vector<8x128xbf16>
    %c0_24 = arith.constant 0 : index
    %c0_25 = arith.constant 0 : index
    %55 = vector.load %arg7[%c0_24, %c0_25] : memref<128x128xbf16, #tpu.memory_space<vmem>>, vector<128x128xbf16>
    %cst_26 = arith.constant dense<0.000000e+00> : vector<8x128xf32>
    %56 = tpu.matmul %54, %55, %cst_26 {dimension_numbers = #tpu.dot_dimension_numbers<[1], [0], [0], [1], [0, 0, 1, 1], [], []>} : vector<8x128xbf16>, vector<128x128xbf16>, vector<8x128xf32> -> vector<8x128xf32>
    %c0_27 = arith.constant 0 : index
    %c0_28 = arith.constant 0 : index
    %57 = vector.load %arg8[%c0_27, %c0_28] : memref<1x128xf32, #tpu.memory_space<vmem>>, vector<1x128xf32>
    %58 = vector.broadcast %57 : vector<1x128xf32> to vector<8x128xf32>
    %59 = arith.addf %56, %58 : vector<8x128xf32>
    %c0_29 = arith.constant 0 : index
    %c0_30 = arith.constant 0 : index
    %60 = vector.load %arg9[%c0_29, %c0_30] : memref<8x128xf32, #tpu.memory_space<vmem>>, vector<8x128xf32>
    tpu.vector_store %arg9[%c0_29, %c0_30], %59 {strides = array<i32>} : memref<8x128xf32, #tpu.memory_space<vmem>>, vector<8x128xf32>,
    return
  }
  func.func @transform_0(%arg0: i32) -> (i32, i32) {
    %c0_i32 = arith.constant 0 : i32
    %c0_i32_0 = arith.constant 0 : i32
    return %arg0, %c0_i32 : i32, i32
  }
  func.func @transform_1(%arg0: i32) -> (i32, i32) {
    %c0_i32 = arith.constant 0 : i32
    %c0_i32_0 = arith.constant 0 : i32
    %c0_i32_1 = arith.constant 0 : i32
    return %c0_i32, %c0_i32_0 : i32, i32
  }
  func.func @transform_2(%arg0: i32) -> (i32, i32) {
    %c0_i32 = arith.constant 0 : i32
    %c0_i32_0 = arith.constant 0 : i32
    %c0_i32_1 = arith.constant 0 : i32
    return %c0_i32, %c0_i32_0 : i32, i32
  }
  func.func @transform_3(%arg0: i32) -> (i32, i32) {
    %c0_i32 = arith.constant 0 : i32
    %c0_i32_0 = arith.constant 0 : i32
    %c0_i32_1 = arith.constant 0 : i32
    return %c0_i32, %c0_i32_0 : i32, i32
  }
  func.func @transform_4(%arg0: i32) -> (i32, i32) {
    %c0_i32 = arith.constant 0 : i32
    %c0_i32_0 = arith.constant 0 : i32
    %c0_i32_1 = arith.constant 0 : i32
    return %c0_i32, %c0_i32_0 : i32, i32
  }
  func.func @transform_5(%arg0: i32) -> (i32, i32) {
    %c0_i32 = arith.constant 0 : i32
    %c0_i32_0 = arith.constant 0 : i32
    %c0_i32_1 = arith.constant 0 : i32
    return %c0_i32, %c0_i32_0 : i32, i32
  }
  func.func @transform_6(%arg0: i32) -> (i32, i32) {
    %c0_i32 = arith.constant 0 : i32
    %c0_i32_0 = arith.constant 0 : i32
    %c0_i32_1 = arith.constant 0 : i32
    return %c0_i32, %c0_i32_0 : i32, i32
  }
  func.func @transform_7(%arg0: i32) -> (i32, i32) {
    %c0_i32 = arith.constant 0 : i32
    %c0_i32_0 = arith.constant 0 : i32
    %c0_i32_1 = arith.constant 0 : i32
    return %c0_i32, %c0_i32_0 : i32, i32
  }
  func.func @transform_8(%arg0: i32) -> (i32, i32) {
    %c0_i32 = arith.constant 0 : i32
    %c0_i32_0 = arith.constant 0 : i32
    return %arg0, %c0_i32 : i32, i32
  }
}

</mosaic_0001>

<bundles_post_ra>
// kernel: tpu_custom_call.1
= control target key start
LH: loop header
LB: loop body
LE: loop exit
PB: predicated region body
PF: predicated region fallthrough
CT: control target
= control target key end

     0   :  { %s3162_s0 = inlined_call_operand.hbm [shape: s32[16,10], index: 0, kind: input, shape index: {}]   ;;  %s3163_s1 = inlined_call_operand.hbm [shape: bf16[128,128], index: 1, kind: input, shape index: {}]   ;;  %s3164_s2 = inlined_call_operand.hbm [shape: bf16[384,128], index: 2, kind: input, shape index: {}]   ;;  %s3165_s3 = inlined_call_operand.vmem [shape: f32[1,128], index: 3, kind: input, shape index: {}]   ;;  %s3166_s4 = inlined_call_operand.hbm [shape: bf16[128,256], index: 4, kind: input, shape index: {}]   ;;  %s3167_s5 = inlined_call_operand.vmem [shape: f32[1,256], index: 5, kind: input, shape index: {}]   ;;  %s3168_s6 = inlined_call_operand.hbm [shape: bf16[128,128], index: 6, kind: input, shape index: {}]   ;;  %s3169_s7 = inlined_call_operand.vmem [shape: f32[1,128], index: 7, kind: input, shape index: {}]   ;;  %s3170_s8 = inlined_call_operand.hbm [shape: f32[16,128], index: 8, kind: output, shape index: {}]  }
   0x1   :  { %3171 = sst [smem:[#allocation16_spill]] %s3163_s1 }
   0x2   :  { %3172 = sst [smem:[#allocation17_spill]] %s3164_s2 }
   0x3   :  { %3173 = sst [smem:[#allocation18_spill]] %s3166_s4 }
   0x4   :  { %13 = vsyncpa [#allocation3], 0 }
   0x5   :  { %15 = vsyncpa [#allocation3 + $0x1], 0 }
   0x6   :  { %16 = vsyncpa [#allocation6], 0 }
   0x7   :  { %17 = vsyncpa [#allocation9], 0 }
   0x8   :  { %18 = vsyncpa [#allocation4], 0 }
   0x9   :  { %20 = vsyncpa [#allocation4 + $0x1], 0  ;;  %s2780_s27 = smov 0   ;;  %s2782_s28 = smov 0  }
   0xa   :  { %s2784_s29 = smov 0   ;;  %s2786_s30 = smov 0  }
   0xb LB: > { %s3174_s1 = sld [smem:[#allocation16_spill]]  ;;  %s2804_s12 = sadd.s32 4294967295, %s2724_s30   ;;  %s2724_s30 = sphi %s2786_s30, %s3192_s30   ;;  %s2720_s29 = sphi %s2784_s29, %s3191_s29   ;;  %s2716_s28 = sphi %s2782_s28, %s3190_s28   ;;  %s2712_s27 = sphi %s2780_s27, %s3189_s27  }
   0xc   : > { %p2072_p0 = scmp.ge.s32.totalorder %s2724_s30, 1  ;;  %p47_p1 = scmp.eq.s32.totalorder %s2804_s12, 0 }
   0xd   : > { %p230_p2 = scmp.lt.s32.totalorder %s2724_s30, 3  ;;  %s2726_s14 = smov [#allocation5]  }
   0xe   : > { %s243_s15 = sshll.u32 %s2726_s14, 4  ;;  %s3176_s4 = sld [smem:[#allocation18_spill]]  ;;  %s244_s15 = int_to_ptr.vmem [resolvable:$true] %s243_s15 }
   0xf   : > { %p2809_p3 = pnand %p2072_p0, %p230_p2  ;;  %s2727_s20 = smov [#allocation8]  }
  0x10   : > { %s274_s21 = sshll.u32 %s2727_s20, 4  ;;  %s2728_s22 = smov 64   ;;  %s275_s21 = int_to_ptr.vmem [resolvable:$true] %s274_s21 }
  0x11   : > { %s241_s11 = sshll.u32 %s3174_s1, 4  ;;  %p2416_p4 = pneg %p2809_p3  ;;  %s242_s11 = int_to_ptr.hbm [resolvable:$true] %s241_s11 }
  0x12   : > { %s2729_s23 = smov 4   ;;  %s2730_s24 = smov 128  }
  0x13   : > { %p2821_p6 = pnand %p2416_p4, %p47_p1  ;;  %s2731_s25 = smov 8  }
  0x14   : > { %s272_s18 = sshll.u32 %s3176_s4, 4  ;;  %s3178_s2 = sld [smem:[#allocation17_spill]]  ;;  %s273_s18 = int_to_ptr.hbm [resolvable:$true] %s272_s18 }
  0x15   : > { %2419 = dma.hbm_to_vmem [thread:$0]  (!%p2821_p6), %s242_s11, 1024, %s244_s15, [#allocation6], %s2728_s22, %s2728_s22, %s2729_s23  }
  0x16   : > { %2425 = dma.hbm_to_vmem [thread:$0]  (!%p2821_p6), %s273_s18, 2048, %s275_s21, [#allocation9], %s2730_s24, %s2730_s24, %s2731_s25  }
  0x17   : > { %s2732_s14 = smov [#allocation7]   ;;  %s289_s17 = sshll.u32 %s3168_s6, 4  ;;  %s290_s17 = int_to_ptr.hbm [resolvable:$true] %s289_s17 }
  0x18   : > { %s257_s11 = sshll.u32 %s2732_s14, 4  ;;  %s2733_s18 = smov [#allocation10]   ;;  %s258_s11 = int_to_ptr.vmem [resolvable:$true] %s257_s11 }
  0x19   : > { %s291_s20 = sshll.u32 %s2733_s18, 4  ;;  %s2071_s21 = sadd.s32 4294967294, %s2724_s30   ;;  %s292_s20 = int_to_ptr.vmem [resolvable:$true] %s291_s20 }
  0x1a   : > { %s255_s10 = sshll.u32 %s3178_s2, 4  ;;  %s2841_s24 = sadd.s32 1, %s2724_s30   ;;  %s256_s10 = int_to_ptr.hbm [resolvable:$true] %s255_s10 }
  0x1b   : > { %2422 = dma.hbm_to_vmem [thread:$0]  (!%p2821_p6), %s256_s10, 3072, %s258_s11, [#allocation6], %s2728_s22, %s2728_s22, %s2729_s23  }
  0x1c   : > { %2428 = dma.hbm_to_vmem [thread:$0]  (!%p2821_p6), %s290_s17, 1024, %s292_s20, [#allocation9], %s2728_s22, %s2728_s22, %s2729_s23  }
  0x1d   : > { %s30_s25 = ssub.s32 %s2724_s30, %s2841_s24  ;;  %s33_s26 = sadd.s32 1, %s2720_s29 }
  0x1e   : > { %p31_p7 = scmp.eq.s32.totalorder %s30_s25, 0  ;;  %p40_p8 = scmp.ne.s32.totalorder %s2720_s29, %s2716_s28 }
  0x1f   : > { %p41_p9 = scmp.eq.s32.totalorder %s2724_s30, 0  ;;  %p46_p10 = scmp.ne.s32.totalorder %s2716_s28, %s2712_s27 }
  0x20   : > { %s2852_s9 = scalar_select %p31_p7, %s2720_s29, %s33_s26  }
  0x21   : > { %p2854_p11 = por %p41_p9, %p40_p8  ;;  %p2860_p12 = por %p47_p1, %p46_p10 }
  0x22   : > { %p217_p13 = scmp.eq.s32.totalorder %s2804_s12, 1  ;;  %p223_p0 = scmp.eq.s32.totalorder %s2071_s21, 1 }
  0x23   : > { %p2441_p2 = scmp.lt.s32.totalorder %s2724_s30, 2  ;;  %s308_s22 = sand.u32 1, %s2720_s29  }
  0x24   : > { %p2867_p4 = por %p217_p13, %p40_p8  ;;  %p2871_p6 = por %p223_p0, %p46_p10 }
  0x25   : > { %s2078_s11 = sshll.u32 %s308_s22, 3  ;;  %s2079_s15 = sshll.u32 %s2724_s30, 3 }
  0x26   : > { %s316_s18 = scalar_lea.hbm %s3162_s0, %s2079_s15  ;;  %s312_s20 = scalar_lea.vmem [#allocation2], %s2078_s11 }
  0x27   : > { %s320_s25 = sshll.u32 %s312_s20, 4  ;;  %s318_s26 = sshll.u32 %s316_s18, 4  ;;  %s321_s25 = int_to_ptr.vmem [resolvable:$true] %s320_s25  ;;  %s319_s26 = int_to_ptr.hbm [resolvable:$true] %s318_s26 }
  0x28   : > { %p2881_p7 = pnand %p2441_p2, %p2854_p11  ;;  %s309_s1 = scalar_lea.sflag [#allocation3], %s308_s22 }
  0x29   : > { %s2620_s2 = sshra.s32 %s319_s26, 4  ;;  %s2627_s16 = scalar_lea.hbm %s3162_s0, 16  ;;  %s2621_s2 = int_to_ptr.hbm [resolvable:$true] %s2620_s2 }
  0x2a   : > { %s2622_s4 = scalar_lea.hbm %s2621_s2, 8  ;;  %p2624_p9 = pneg %p2881_p7 }
  0x2b   : > { %p2623_p8 = scmp.ne.s32.totalorder %s2621_s2, %s2622_s4  ;;  %p2628_p11 = scmp.lt.s32.totalorder %s2621_s2, %s3162_s0 }
  0x2c   : > { %p2629_p0 = scmp.lt.s32.totalorder %s2627_s16, %s2622_s4 }
  0x2d   : > { %p2625_p10 = pnand %p2624_p9, %p2623_p8 }
  0x2e   : > { %p2630_p2 = por %p2629_p0, %p2628_p11 }
  0x2f   : > { %p2626_p13 = pneg %p2625_p10 }
  0x31   : > { %p2631_p5 = pnand %p2630_p2, %p2626_p13 }
  0x33   : > { %2634 = shalt.err (!%p2631_p5)
}
  0x34   : > { %2432 = dma.hbm_to_vmem [thread:$0]  (!%p2881_p7), %s319_s26, 128, %s321_s25, %s309_s1  }
  0x35   : > { %329 = sbr.rel (%p2809_p3) target bundleno = 911 (0x38f), region = 52  ;;  %s2898_s22 = sand.u32 (!%p2809_p3), 1, %s2716_s28  }
  0x36   : > { %s2081_s18 = sshll.u32 (!%p2809_p3), %s2898_s22, 3  ;;  %s332_s20 = scalar_lea.sflag (!%p2809_p3), [#allocation3], %s2898_s22 }
  0x37   : > { %s335_s2 = scalar_lea.vmem (!%p2809_p3), [#allocation2], %s2081_s18 }
  0x3a   : > { %2695 = dma.done.wait (%p2860_p12), %s332_s20, 128  }
  0x3b   : > { %2697 = vsyncadd (%p2860_p12), %s332_s20, 4294967168 }
  0x3c   : > { %2699 = dma.done.wait (%p47_p1), [#allocation6], 4096  }
  0x3d   : > { %2701 = vsyncadd (%p47_p1), [#allocation6], 4294963200 }
  0x3e   : > { %2703 = dma.done.wait (%p47_p1), [#allocation9], 3072  }
  0x3f   : > { %2705 = vsyncadd (%p47_p1), [#allocation9], 4294964224  ;;  %v391_v0 = vlaneseq  ;;  %v389_v3 = vld [vmem:[%s335_s2] sm:$0xff]  ;;  %v2345_v14 = vld [vmem:[#allocation5 + $0x28] sm:$0xff]  ;;  %v2734_v23 = vmov 0.0   ;;  %vm608_vm1 = vcmask 1040384  }
  0x40   : > { %v390_v4 = vperm.slane %v389_v3, 0  ;;  %v403_v5 = vperm.slane %v389_v3, 1  ;;  %v416_v6 = vperm.slane %v389_v3, 2  ;;  %v429_v7 = vperm.slane %v389_v3, 3  ;;  %v2347_v12 = vld [vmem:[#allocation5 + $0x38] sm:$0xff]  ;;  %v2346_v13 = vld [vmem:[#allocation5 + $0x30] sm:$0xff] }
  0x41   : > { %v392_v1 = vshrl.u32 %v391_v0, 7  ;;  %v455_v8 = vperm.slane %v389_v3, 5  ;;  %v442_v9 = vperm.slane %v389_v3, 4  ;;  %v468_v10 = vperm.slane %v389_v3, 6  ;;  %861 = vmatpush.bf16.msra.mxu0 %v2347_v12  ;;  %v2344_v15 = vld [vmem:[#allocation5 + $0x20] sm:$0xff]  ;;  %v2343_v16 = vld [vmem:[#allocation5 + $0x18] sm:$0xff] }
  0x42   : > { %v481_v11 = vperm.slane %v389_v3, 7  ;;  %v2342_v17 = vld [vmem:[#allocation5 + $0x10] sm:$0xff]  ;;  %v2341_v18 = vld [vmem:[#allocation5 + $0x8] sm:$0xff]  ;;  %v2916_v19 = vand.u32 127, %v391_v0  ;;  %v2340_v20 = vld [vmem:[#allocation5] sm:$0xff]  ;;  %vm612_vm3 = vcmask 1041409  }
  0x43   : > { %2488 = vset.pattern.permute.xlu0 %v392_v1  ;;  %v399_v2 = vadd.s32 8, %v392_v1  ;;  %vm616_vm4 = vcmask 1042434   ;;  %vm620_vm5 = vcmask 1043459   ;;  %s2337_s25 = sshll.u32 %s2804_s12, 3  ;;  %s388_s17 = scalar_lea.vmem [#allocation11], %s2081_s18 }
  0x44   : > { %s1958_s11 = scalar_lea.hbm %s3170_s8, %s2337_s25  ;;  %s1960_s10 = sshll.u32 %s388_s17, 4  ;;  %s1961_s10 = int_to_ptr.vmem [resolvable:$true] %s1960_s10 }
  0x45   : > { %2489 = vset.pattern.permute.xlu1 %v399_v2  ;;  %2491 = vset.pattern.permute.xlu2 %v399_v2  ;;  %s1962_s20 = sshll.u32 %s1958_s11, 4  ;;  %s1948_s2 = scalar_lea.sflag [#allocation4], %s2898_s22  ;;  %s1963_s20 = int_to_ptr.hbm [resolvable:$true] %s1962_s20 }
  0x46   : > { %862 = vmatpush.bf16.msra.mxu0 %v2346_v13  ;;  %s2664_s12 = sshra.s32 %s1963_s20, 4  ;;  %s2670_s19 = scalar_lea.hbm %s3170_s8, 16  ;;  %s2665_s12 = int_to_ptr.hbm [resolvable:$true] %s2664_s12 }
  0x47   : > { %s2666_s1 = scalar_lea.hbm %s2665_s12, 8  ;;  %p2671_p12 = scmp.lt.s32.totalorder %s2665_s12, %s3170_s8 }
  0x48   : > { %p2667_p1 = scmp.ne.s32.totalorder %s2665_s12, %s2666_s1  ;;  %p2672_p7 = scmp.lt.s32.totalorder %s2670_s19, %s2666_s1 }
  0x4a   : > { %863 = vmatpush.bf16.msra.mxu0 %v2345_v14  ;;  %p2668_p3 = pnand %p2667_p1, %p2867_p4  ;;  %p2673_p8 = por %p2672_p7, %p2671_p12 }
  0x4b   : > { %395 = vperm.xlu0 %2488, %v390_v4  }
  0x4c   : > { %p2669_p5 = pneg %p2668_p3 }
  0x4d   : > { %401 = vperm.xlu1 %2489, %v390_v4   ;;  %414 = vperm.xlu2 %2491, %v403_v5  }
  0x4e   : > { %864 = vmatpush.bf16.msra.mxu0 %v2344_v15  ;;  %p2674_p9 = pnand %p2673_p8, %p2669_p5 }
  0x52   : > { %865 = vmatpush.bf16.msra.mxu0 %v2343_v16 }
  0x53   : > { %408 = vperm.xlu0 %2488, %v403_v5  }
  0x55   : > { %2490 = vset.pattern.permute.xlu1 %v392_v1  ;;  %427 = vperm.xlu2 %2491, %v416_v6  }
  0x56   : > { %866 = vmatpush.bf16.msra.mxu0 %v2342_v17 }
  0x5a   : > { %867 = vmatpush.bf16.msra.mxu0 %v2341_v18 }
  0x5b   : > { %434 = vperm.xlu0 %2488, %v429_v7  }
  0x5d   : > { %421 = vperm.xlu1 %2490, %v416_v6   ;;  %440 = vperm.xlu2 %2491, %v429_v7  }
  0x5e   : > { %868 = vmatpush.bf16.msra.mxu0 %v2340_v20 }
  0x63   : > { %460 = vperm.xlu0 %2488, %v455_v8  }
  0x65   : > { %447 = vperm.xlu1 %2490, %v442_v9   ;;  %453 = vperm.xlu2 %2491, %v442_v9  }
  0x6b   : > { %2492 = vset.pattern.permute.xlu0 %v399_v2 }
  0x6d   : > { %473 = vperm.xlu1 %2490, %v468_v10   ;;  %479 = vperm.xlu2 %2491, %v468_v10  }
  0x73   : > { %466 = vperm.xlu0 %2492, %v455_v8  }
  0x75   : > { %486 = vperm.xlu1 %2490, %v481_v11  }
  0x7d   : > { %2493 = vset.pattern.permute.xlu1 %v399_v2 }
  0x85   : > { %492 = vperm.xlu1 %2493, %v481_v11  }
  0xa7   : > { %v415_v22 = vpop.permute.xlu2 %414 }
  0xa8   : > { %vm499_vm7 = vcmp.eq.s32.totalorder %v415_v22, %v2916_v19 }
  0xa9   : > { %v2090_v47 = vsel %vm499_vm7, 1.0, %v2734_v23 }
  0xaa   : > { %v547_v54 = vpack.c.bf16 %v2090_v47, %v2090_v47 }
  0xac   : > { %v595_v60 = vrot.slane %v547_v54, 3 }
  0xae   : > { %v641_v5 = vsel %vm608_vm1, %v547_v54, %v595_v60 }
  0xaf   : > { %v428_v42 = vpop.permute.xlu2 %427 }
  0xb0   : > { %vm501_vm8 = vcmp.eq.s32.totalorder %v428_v42, %v2916_v19 }
  0xb1   : > { %v2092_v48 = vsel %vm501_vm8, 1.0, %v2734_v23  ;;  %vm1393_vm8 = vcmask 1046532  }
  0xb2   : > { %v549_v55 = vpack.c.bf16 %v2092_v48, %v2092_v48 }
  0xb4   : > { %v597_v61 = vrot.slane %v549_v55, 3 }
  0xb6   : > { %v656_v6 = vsel %vm608_vm1, %v549_v55, %v597_v61 }
  0xb7   : > { %v441_v7 = vpop.permute.xlu2 %440 }
  0xb8   : > { %vm503_vm11 = vcmp.eq.s32.totalorder %v441_v7, %v2916_v19 }
  0xb9   : > { %v2094_v15 = vsel %vm503_vm11, 1.0, %v2734_v23  ;;  %vm1060_vm11 = vsmask.f32 7440 }
  0xba   : > { %v551_v17 = vpack.c.bf16 %v2094_v15, %v2094_v15 }
  0xbc   : > { %v599_v22 = vrot.slane %v551_v17, 3 }
  0xbd   : > { %v396_v21 = vpop.permute.xlu0 %395 }
  0xbe   : > { %vm496_vm0 = vcmp.eq.s32.totalorder %v396_v21, %v2916_v19 }
  0xbf   : > { %v2087_v24 = vsel %vm496_vm0, 1.0, %v2734_v23  ;;  %v402_v25 = vpop.permute.xlu1 %401 }
  0xc0   : > { %v544_v26 = vpack.c.bf16 %v2087_v24, %v2087_v24  ;;  %vm497_vm2 = vcmp.eq.s32.totalorder %v402_v25, %v2916_v19 }
  0xc1   : > { %v2088_v27 = vsel %vm497_vm2, 1.0, %v2734_v23 }
  0xc2   : > { %v592_v28 = vrot.slane %v544_v26, 3  ;;  %v545_v29 = vpack.c.bf16 %v2088_v27, %v2088_v27 }
  0xc4   : > { %v611_v30 = vsel %vm608_vm1, %v544_v26, %v592_v28  ;;  %v613_v31 = vsel %vm612_vm3, %v544_v26, %v592_v28  ;;  %v617_v32 = vsel %vm616_vm4, %v544_v26, %v592_v28  ;;  %v621_v33 = vsel %vm620_vm5, %v544_v26, %v592_v28 }
  0xc5   : > { %v615_v34 = vrot.slane %v613_v31, 1  ;;  %v619_v35 = vrot.slane %v617_v32, 2  ;;  %v623_v36 = vrot.slane %v621_v33, 3  ;;  %732 = vst [vmem:[#allocation1] ss:$9 sm:$0xff] %v611_v30  ;;  %v593_v37 = vrot.slane %v545_v29, 3  ;;  %v409_v38 = vpop.permute.xlu0 %408  ;;  %v454_v33 = vpop.permute.xlu2 %453 }
  0xc6   : > { %vm498_vm6 = vcmp.eq.s32.totalorder %v409_v38, %v2916_v19  ;;  %v671_v32 = vsel %vm608_vm1, %v551_v17, %v599_v22  ;;  %vm505_vm15 = vcmp.eq.s32.totalorder %v454_v33, %v2916_v19  ;;  %v2363_v33 = vld [vmem:[#allocation7 + $0x78] sm:$0xff] }
  0xc7   : > { %735 = vst [vmem:[#allocation1 + $0x1] ss:$9 sm:$0xff] %v615_v34  ;;  %v626_v39 = vsel %vm608_vm1, %v545_v29, %v593_v37  ;;  %v2089_v40 = vsel %vm498_vm6, 1.0, %v2734_v23  ;;  %1238 = vmatpush.bf16.msra.mxu1 %v2363_v33 }
  0xc8   : > { %738 = vst [vmem:[#allocation1 + $0x2] ss:$9 sm:$0xff] %v619_v35  ;;  %v546_v41 = vpack.c.bf16 %v2089_v40, %v2089_v40 }
  0xc9   : > { %741 = vst [vmem:[#allocation1 + $0x3] ss:$9 sm:$0xff] %v623_v36 }
  0xca   : > { %743 = vst [vmem:[#allocation1 + $0x4] ss:$9 sm:$0xff] %v626_v39  ;;  %v594_v43 = vrot.slane %v546_v41, 3 }
  0xcc   : > { %v629_v44 = vsel %vm608_vm1, %v546_v41, %v594_v43  ;;  %v630_v45 = vsel %vm612_vm3, %v546_v41, %v594_v43  ;;  %v633_v46 = vsel %vm616_vm4, %v546_v41, %v594_v43  ;;  %v636_v59 = vsel %vm620_vm5, %v546_v41, %v594_v43 }
  0xcd   : > { %v632_v49 = vrot.slane %v630_v45, 1  ;;  %v635_v50 = vrot.slane %v633_v46, 2  ;;  %745 = vst [vmem:[#allocation1 + $0x5] ss:$9 sm:$0xff] %v629_v44  ;;  %v435_v51 = vpop.permute.xlu0 %434  ;;  %v638_v63 = vrot.slane %v636_v59, 3  ;;  %v2096_v44 = vsel %vm505_vm15, 1.0, %v2734_v23 }
  0xce   : > { %vm502_vm9 = vcmp.eq.s32.totalorder %v435_v51, %v2916_v19  ;;  %v553_v47 = vpack.c.bf16 %v2096_v44, %v2096_v44  ;;  %vm1653_vm15 = vcmask 1044484  }
  0xcf   : > { %748 = vst [vmem:[#allocation1 + $0x6] ss:$9 sm:$0xff] %v632_v49  ;;  %v2093_v52 = vsel %vm502_vm9, 1.0, %v2734_v23  ;;  %v422_v53 = vpop.permute.xlu1 %421  ;;  %vm1059_vm9 = vsmask.f32 3328 }
  0xd0   : > { %751 = vst [vmem:[#allocation1 + $0x7] ss:$9 sm:$0xff] %v635_v50  ;;  %vm500_vm10 = vcmp.eq.s32.totalorder %v422_v53, %v2916_v19  ;;  %v550_v57 = vpack.c.bf16 %v2093_v52, %v2093_v52  ;;  %v601_v52 = vrot.slane %v553_v47, 3 }
  0xd1   : > { %v2091_v56 = vsel %vm500_vm10, 1.0, %v2734_v23 }
  0xd2   : > { %v548_v58 = vpack.c.bf16 %v2091_v56, %v2091_v56  ;;  %v598_v0 = vrot.slane %v550_v57, 3  ;;  %v686_v59 = vsel %vm608_vm1, %v553_v47, %v601_v52  ;;  %v2358_v52 = vld [vmem:[#allocation7 + $0x50] sm:$0xff] }
  0xd4   : > { %v596_v62 = vrot.slane %v548_v58, 3  ;;  %v659_v11 = vsel %vm608_vm1, %v550_v57, %v598_v0  ;;  %v666_v21 = vsel %vm620_vm5, %v550_v57, %v598_v0  ;;  %v660_v24 = vsel %vm612_vm3, %v550_v57, %v598_v0 }
  0xd5   : > { %v461_v18 = vpop.permute.xlu0 %460  ;;  %v663_v26 = vsel %vm616_vm4, %v550_v57, %v598_v0  ;;  %v668_v27 = vrot.slane %v666_v21, 3  ;;  %v662_v34 = vrot.slane %v660_v24, 1 }
  0xd6   : > { %v645_v2 = vsel %vm612_vm3, %v548_v58, %v596_v62  ;;  %v648_v3 = vsel %vm616_vm4, %v548_v58, %v596_v62  ;;  %v651_v8 = vsel %vm620_vm5, %v548_v58, %v596_v62  ;;  %v644_v9 = vsel %vm608_vm1, %v548_v58, %v596_v62 }
  0xd7   : > { %v752_v1 = vld [vmem:[#allocation1] sm:$0xff]  ;;  %v448_v4 = vpop.permute.xlu1 %447  ;;  %v647_v10 = vrot.slane %v645_v2, 1  ;;  %v650_v12 = vrot.slane %v648_v3, 2  ;;  %v653_v14 = vrot.slane %v651_v8, 3  ;;  %vm506_vm13 = vcmp.eq.s32.totalorder %v461_v18, %v2916_v19  ;;  %v480_v3 = vpop.permute.xlu2 %479 }
  0xd8   : > { %754 = vst [vmem:[#allocation1] ss:$9 sm:$0xff] %v638_v63  ;;  %869 = vmatmul.bf16.vlgmr.msra.gmra.mxu0 %v752_v1  ;;  %vm504_vm12 = vcmp.eq.s32.totalorder %v448_v4, %v2916_v19  ;;  %v2097_v30 = vsel %vm506_vm13, 1.0, %v2734_v23  ;;  %v665_v36 = vrot.slane %v663_v26, 2  ;;  %vm509_vm7 = vcmp.eq.s32.totalorder %v480_v3, %v2916_v19 }
  0xd9   : > { %763 = vst [vmem:[#allocation1 + $0x6] ss:$9 sm:$0xff] %v656_v6  ;;  %v2095_v13 = vsel %vm504_vm12, 1.0, %v2734_v23  ;;  %v554_v38 = vpack.c.bf16 %v2097_v30, %v2097_v30  ;;  %v2371_v30 = vld [vmem:[#allocation7 + $0xb8] sm:$0xff]  ;;  %vm2999_vm12 = vmor %vm1059_vm9, %vm1060_vm11  ;;  %vm1528_vm13 = vcmask 63488  }
  0xda   : > { %755 = vst [vmem:[#allocation1 + $0x1] ss:$9 sm:$0xff] %v641_v5  ;;  %v552_v16 = vpack.c.bf16 %v2095_v13, %v2095_v13  ;;  %1491 = vmatpush.bf16.msra.mxu3 %v2371_v30 }
  0xdb   : > { %764 = vst [vmem:[#allocation1 + $0x7] ss:$9 sm:$0xff] %v659_v11  ;;  %v602_v45 = vrot.slane %v554_v38, 3 }
  0xdc   : > { %756 = vst [vmem:[#allocation1 + $0x2] ss:$9 sm:$0xff] %v644_v9  ;;  %v600_v20 = vrot.slane %v552_v16, 3  ;;  %v2100_v9 = vsel %vm509_vm7, 1.0, %v2734_v23 }
  0xdd   : > { %758 = vst [vmem:[#allocation1 + $0x3] ss:$9 sm:$0xff] %v647_v10  ;;  %v696_v50 = vsel %vm620_vm5, %v554_v38, %v602_v45  ;;  %v690_v54 = vsel %vm612_vm3, %v554_v38, %v602_v45  ;;  %v693_v56 = vsel %vm616_vm4, %v554_v38, %v602_v45  ;;  %v689_v62 = vsel %vm608_vm1, %v554_v38, %v602_v45  ;;  %v2351_v38 = vld [vmem:[#allocation7 + $0x18] sm:$0xff] }
  0xde   : > { %760 = vst [vmem:[#allocation1 + $0x4] ss:$9 sm:$0xff] %v650_v12  ;;  %v675_v28 = vsel %vm612_vm3, %v552_v16, %v600_v20  ;;  %v678_v31 = vsel %vm616_vm4, %v552_v16, %v600_v20  ;;  %v681_v35 = vsel %vm620_vm5, %v552_v16, %v600_v20  ;;  %v674_v41 = vsel %vm608_vm1, %v552_v16, %v600_v20 }
  0xdf   : > { %762 = vst [vmem:[#allocation1 + $0x5] ss:$9 sm:$0xff] %v653_v14  ;;  %v474_v25 = vpop.permute.xlu1 %473  ;;  %v677_v37 = vrot.slane %v675_v28, 1  ;;  %v680_v39 = vrot.slane %v678_v31, 2  ;;  %v683_v42 = vrot.slane %v681_v35, 3  ;;  %v698_v55 = vrot.slane %v696_v50, 3 }
  0xe0   : > { %vm508_vm14 = vcmp.eq.s32.totalorder %v474_v25, %v2916_v19  ;;  %v692_v63 = vrot.slane %v690_v54, 1  ;;  %v695_v0 = vrot.slane %v693_v56, 2  ;;  %v557_v12 = vpack.c.bf16 %v2100_v9, %v2100_v9  ;;  %v2354_v31 = vld [vmem:[#allocation7 + $0x30] sm:$0xff]  ;;  %v2352_v35 = vld [vmem:[#allocation7 + $0x20] sm:$0xff] }
  0xe1   : > { %v2099_v43 = vsel %vm508_vm14, 1.0, %v2734_v23  ;;  %v2366_v50 = vld [vmem:[#allocation7 + $0x90] sm:$0xff]  ;;  %vm1585_vm14 = vcmask 128064  }
  0xe2   : > { %v556_v46 = vpack.c.bf16 %v2099_v43, %v2099_v43  ;;  %v2367_v43 = vld [vmem:[#allocation7 + $0x98] sm:$0xff] }
  0xe4   : > { %v604_v51 = vrot.slane %v556_v46, 3 }
  0xe5   : > { %v467_v40 = vpop.permute.xlu0 %466 }
  0xe6   : > { %v765_v29 = vld [vmem:[#allocation1] sm:$0xff]  ;;  %vm507_vm0 = vcmp.eq.s32.totalorder %v467_v40, %v2916_v19  ;;  %v705_v58 = vsel %vm612_vm3, %v556_v46, %v604_v51  ;;  %v704_v5 = vsel %vm608_vm1, %v556_v46, %v604_v51  ;;  %v708_v15 = vsel %vm616_vm4, %v556_v46, %v604_v51  ;;  %v2368_v40 = vld [vmem:[#allocation7 + $0xa0] sm:$0xff] }
  0xe7   : > { %771 = vst [vmem:[#allocation1 + $0x2] ss:$9 sm:$0xff] %v668_v27  ;;  %v2098_v48 = vsel %vm507_vm0, 1.0, %v2734_v23  ;;  %v487_v49 = vpop.permute.xlu1 %486  ;;  %v707_v1 = vrot.slane %v705_v58, 1  ;;  %v711_v18 = vsel %vm620_vm5, %v556_v46, %v604_v51  ;;  %v710_v24 = vrot.slane %v708_v15, 2  ;;  %v2348_v51 = vld [vmem:[#allocation7] sm:$0xff] }
  0xe8   : > { %772 = vst [vmem:[#allocation1 + $0x3] ss:$9 sm:$0xff] %v671_v32  ;;  %874 = vmatmul.bf16.gmra.mxu0 %v765_v29  ;;  %v555_v53 = vpack.c.bf16 %v2098_v48, %v2098_v48  ;;  %vm510_vm2 = vcmp.eq.s32.totalorder %v487_v49, %v2916_v19  ;;  %v713_v25 = vrot.slane %v711_v18, 3  ;;  %v2355_v29 = vld [vmem:[#allocation7 + $0x38] sm:$0xff]  ;;  %v2353_v32 = vld [vmem:[#allocation7 + $0x28] sm:$0xff]  ;;  %vm1657_vm0 = vcmask 1046534  }
  0xe9   : > { %767 = vst [vmem:[#allocation1] ss:$9 sm:$0xff] %v662_v34  ;;  %v2101_v61 = vsel %vm510_vm2, 1.0, %v2734_v23  ;;  %1339 = vmatpush.bf16.msra.mxu2 %v2355_v29  ;;  %v2370_v34 = vld [vmem:[#allocation7 + $0xb0] sm:$0xff]  ;;  %v2349_v48 = vld [vmem:[#allocation7 + $0x8] sm:$0xff]  ;;  %v2359_v49 = vld [vmem:[#allocation7 + $0x58] sm:$0xff] }
  0xea   : > { %769 = vst [vmem:[#allocation1 + $0x1] ss:$9 sm:$0xff] %v665_v36  ;;  %v603_v60 = vrot.slane %v555_v53, 3  ;;  %v558_v4 = vpack.c.bf16 %v2101_v61, %v2101_v61  ;;  %v2362_v36 = vld [vmem:[#allocation7 + $0x70] sm:$0xff]  ;;  %1492 = vmatpush.bf16.msra.mxu3 %v2370_v34  ;;  %vm1703_vm2 = vcmask 130048  }
  0xeb   : > { %773 = vst [vmem:[#allocation1 + $0x4] ss:$9 sm:$0xff] %v674_v41  ;;  %1239 = vmatpush.bf16.msra.mxu1 %v2362_v36  ;;  %v2350_v41 = vld [vmem:[#allocation7 + $0x10] sm:$0xff] }
  0xec   : > { %775 = vst [vmem:[#allocation1 + $0x5] ss:$9 sm:$0xff] %v677_v37  ;;  %v701_v6 = vsel %vm608_vm1, %v555_v53, %v603_v60  ;;  %v606_v7 = vrot.slane %v558_v4, 3  ;;  %v2369_v37 = vld [vmem:[#allocation7 + $0xa8] sm:$0xff]  ;;  %v2364_v60 = vld [vmem:[#allocation7 + $0x80] sm:$0xff] }
  0xed   : > { %777 = vst [vmem:[#allocation1 + $0x6] ss:$9 sm:$0xff] %v680_v39  ;;  %1340 = vmatpush.bf16.msra.mxu2 %v2354_v31  ;;  %v2361_v39 = vld [vmem:[#allocation7 + $0x68] sm:$0xff] }
  0xee   : > { %779 = vst [vmem:[#allocation1 + $0x7] ss:$9 sm:$0xff] %v683_v42  ;;  %v720_v10 = vsel %vm612_vm3, %v558_v4, %v606_v7  ;;  %v723_v13 = vsel %vm616_vm4, %v558_v4, %v606_v7  ;;  %v726_v14 = vsel %vm620_vm5, %v558_v4, %v606_v7  ;;  %v719_v16 = vsel %vm608_vm1, %v558_v4, %v606_v7  ;;  %v2360_v42 = vld [vmem:[#allocation7 + $0x60] sm:$0xff]  ;;  %v2365_v53 = vld [vmem:[#allocation7 + $0x88] sm:$0xff] }
  0xef   : > { %v725_v20 = vrot.slane %v723_v13, 2  ;;  %v728_v22 = vrot.slane %v726_v14, 3  ;;  %1493 = vmatpush.bf16.msra.mxu3 %v2369_v37  ;;  %1240 = vmatpush.bf16.msra.mxu1 %v2361_v39 }
  0xf1   : > { %1341 = vmatpush.bf16.msra.mxu2 %v2353_v32 }
  0xf3   : > { %1494 = vmatpush.bf16.msra.mxu3 %v2368_v40  ;;  %1241 = vmatpush.bf16.msra.mxu1 %v2360_v42 }
  0xf5   : > { %v780_v57 = vld [vmem:[#allocation1] sm:$0xff]  ;;  %1342 = vmatpush.bf16.msra.mxu2 %v2352_v35 }
  0xf6   : > { %788 = vst [vmem:[#allocation1 + $0x4] ss:$9 sm:$0xff] %v698_v55 }
  0xf7   : > { %781 = vst [vmem:[#allocation1] ss:$9 sm:$0xff] %v686_v59  ;;  %v493_v2 = vpop.permute.xlu1 %492  ;;  %1495 = vmatpush.bf16.msra.mxu3 %v2367_v43  ;;  %1242 = vmatpush.bf16.msra.mxu1 %v2359_v49  ;;  %v2357_v59 = vld [vmem:[#allocation7 + $0x48] sm:$0xff] }
  0xf8   : > { %782 = vst [vmem:[#allocation1 + $0x1] ss:$9 sm:$0xff] %v689_v62  ;;  %879 = vmatmul.bf16.gmra.mxu0 %v780_v57  ;;  %vm511_vm6 = vcmp.eq.s32.totalorder %v493_v2, %v2916_v19  ;;  %v722_v19 = vrot.slane %v720_v10, 1 }
  0xf9   : > { %784 = vst [vmem:[#allocation1 + $0x2] ss:$9 sm:$0xff] %v692_v63  ;;  %v2102_v8 = vsel %vm511_vm6, 1.0, %v2734_v23  ;;  %v605_v23 = vrot.slane %v557_v12, 3  ;;  %1343 = vmatpush.bf16.msra.mxu2 %v2351_v38  ;;  %v2356_v63 = vld [vmem:[#allocation7 + $0x40] sm:$0xff] }
  0xfa   : > { %786 = vst [vmem:[#allocation1 + $0x3] ss:$9 sm:$0xff] %v695_v0  ;;  %v559_v11 = vpack.c.bf16 %v2102_v8, %v2102_v8 }
  0xfb   : > { %790 = vst [vmem:[#allocation1 + $0x6] ss:$9 sm:$0xff] %v704_v5  ;;  %v716_v27 = vsel %vm608_vm1, %v557_v12, %v605_v23  ;;  %1496 = vmatpush.bf16.msra.mxu3 %v2366_v50  ;;  %1243 = vmatpush.bf16.msra.mxu1 %v2358_v52 }
  0xfc   : > { %792 = vst [vmem:[#allocation1 + $0x7] ss:$9 sm:$0xff] %v707_v1  ;;  %v607_v21 = vrot.slane %v559_v11, 3 }
  0xfd   : > { %789 = vst [vmem:[#allocation1 + $0x5] ss:$9 sm:$0xff] %v701_v6  ;;  %1344 = vmatpush.bf16.msra.mxu2 %v2350_v41 }
  0xfe   : > { %v731_v26 = vsel %vm608_vm1, %v559_v11, %v607_v21  ;;  %vm1392_vm1 = vcmask 1042432  }
  0xff   : > { %1497 = vmatpush.bf16.msra.mxu3 %v2365_v53  ;;  %1244 = vmatpush.bf16.msra.mxu1 %v2357_v59  ;;  %vm2991_vm10 = vmor %vm1392_vm1, %vm1393_vm8 }
 0x101   : > { %1345 = vmatpush.bf16.msra.mxu2 %v2349_v48 }
 0x103   : > { %1498 = vmatpush.bf16.msra.mxu3 %v2364_v60  ;;  %1245 = vmatpush.bf16.msra.mxu1 %v2356_v63 }
 0x104   : > { %v793_v17 = vld [vmem:[#allocation1] sm:$0xff] }
 0x105   : > { %799 = vst [vmem:[#allocation1 + $0x3] ss:$9 sm:$0xff] %v719_v16  ;;  %1346 = vmatpush.bf16.msra.mxu2 %v2348_v51 }
 0x106   : > { %801 = vst [vmem:[#allocation1 + $0x4] ss:$9 sm:$0xff] %v722_v19 }
 0x107   : > { %803 = vst [vmem:[#allocation1 + $0x5] ss:$9 sm:$0xff] %v725_v20 }
 0x108   : > { %805 = vst [vmem:[#allocation1 + $0x6] ss:$9 sm:$0xff] %v728_v22  ;;  %884 = vmatmul.bf16.gmra.mxu0 %v793_v17 }
 0x109   : > { %795 = vst [vmem:[#allocation1] ss:$9 sm:$0xff] %v710_v24 }
 0x10a   : > { %797 = vst [vmem:[#allocation1 + $0x1] ss:$9 sm:$0xff] %v713_v25 }
 0x10b   : > { %798 = vst [vmem:[#allocation1 + $0x2] ss:$9 sm:$0xff] %v716_v27 }
 0x10c   : > { %806 = vst [vmem:[#allocation1 + $0x7] ss:$9 sm:$0xff] %v731_v26 }
 0x113   : > { %v807_v28 = vld [vmem:[#allocation1] sm:$0xff] }
 0x118   : > { %889 = vmatmul.bf16.gmra.mxu0 %v807_v28 }
 0x155   : > { %v870_v44 = vpop.f32.mrf.mxu0 }
 0x156   : > { %v905_v45 = vrot.slane %v870_v44, 2  ;;  %v906_v46 = vrot.slane %v870_v44, 4  ;;  %v907_v47 = vrot.slane %v870_v44, 6  ;;  %935 = vst [vmem:[#allocation1] ss:$4 sm:$0xff] %v870_v44 }
 0x158   : > { %937 = vst [vmem:[#allocation1 + $0x1] ss:$4 sm:$0xff] %v905_v45 }
 0x159   : > { %939 = vst [vmem:[#allocation1 + $0x2] ss:$4 sm:$0xff] %v906_v46 }
 0x15a   : > { %941 = vst [vmem:[#allocation1 + $0x3] ss:$4 sm:$0xff] %v907_v47 }
 0x15d   : > { %v872_v54 = vpop.f32.mrf.mxu0 }
 0x15e   : > { %v908_v55 = vrot.slane %v872_v54, 2  ;;  %943 = vst [vmem:[#allocation1 + $0x20] ss:$4 sm:$0xff] %v872_v54  ;;  %v909_v56 = vrot.slane %v872_v54, 4  ;;  %v910_v57 = vrot.slane %v872_v54, 6 }
 0x161   : > { %v944_v58 = vld.sshfl [vmem:[#allocation1] sm:$0xff pattern:$0x73625140] }
 0x162   : > { %946 = vst [vmem:[#allocation1] ss:$4 sm:$0xff] %v908_v55  ;;  %v1011_v61 = vpack.c.bf16 %v944_v58, %v944_v58 }
 0x163   : > { %947 = vst [vmem:[#allocation1 + $0x1] ss:$4 sm:$0xff] %v909_v56 }
 0x164   : > { %948 = vst [vmem:[#allocation1 + $0x2] ss:$4 sm:$0xff] %v910_v57  ;;  %v1063_v2 = vshrl.u32 %v1011_v61, 16  ;;  %v1066_v3 = vshll.u32 %v1011_v61, 16  ;;  %v1275_v17 = vunpack.c.l.b16 %v1011_v61  ;;  %v2199_v18 = vrot.slane %v1011_v61, 9 }
 0x165   : > { %v875_v62 = vpop.f32.mrf.mxu0  ;;  %v945_v1 = vld.sshfl [vmem:[#allocation1 + $0x20] sm:$0xff pattern:$0x73625140] }
 0x166   : > { %v911_v0 = vrot.slane %v875_v62, 2  ;;  %949 = vst [vmem:[#allocation1 + $0x3] ss:$4 sm:$0xff] %v875_v62  ;;  %v1012_v4 = vpack.c.bf16 %v945_v1, %v945_v1  ;;  %v912_v5 = vrot.slane %v875_v62, 4  ;;  %v1065_v6 = vrot.slane %v1063_v2, 4 }
 0x167   : > { %v1068_v7 = vrot.slane %v1066_v3, 5  ;;  %v913_v8 = vrot.slane %v875_v62, 6 }
 0x168   : > { %950 = vst [vmem:[#allocation1 + $0x20] ss:$4 sm:$0xff] %v911_v0  ;;  %v1397_v11 = vrot.slane %v1012_v4, 5  ;;  %v1072_v12 = vshll.u32 %v1012_v4, 16 }
 0x169   : > { %v1069_v23 = vor.u32 %v1068_v7, %v1065_v6 }
 0x16a   : > { %v1398_v24 = vsel %vm2991_vm10, %v2199_v18, %v1397_v11  ;;  %v1074_v25 = vrot.slane %v1072_v12, 5 }
 0x16b   : > { %v1070_v35 = vrot.slane %v1069_v23, 4  ;;  %v1427_v37 = vunpack.c.l.b16 %v1398_v24 }
 0x16d   : > { %v951_v9 = vld.sshfl [vmem:[#allocation1] sm:$0xff pattern:$0x73625140]  ;;  %v877_v10 = vpop.f32.mrf.mxu0  ;;  %v1075_v41 = vsel %vm2999_vm12, %v1070_v35, %v1074_v25 }
 0x16e   : > { %953 = vst [vmem:[#allocation1] ss:$4 sm:$0xff] %v912_v5  ;;  %v914_v13 = vrot.slane %v877_v10, 2  ;;  %v915_v14 = vrot.slane %v877_v10, 4  ;;  %v1013_v15 = vpack.c.bf16 %v951_v9, %v951_v9  ;;  %v916_v40 = vrot.slane %v877_v10, 6 }
 0x16f   : > { %954 = vst [vmem:[#allocation1 + $0x1] ss:$4 sm:$0xff] %v913_v8  ;;  %v952_v19 = vld.sshfl [vmem:[#allocation1 + $0x20] sm:$0xff pattern:$0x73625140]  ;;  %v1174_v51 = vunpack.c.l.b16 %v1075_v41 }
 0x170   : > { %955 = vst [vmem:[#allocation1 + $0x2] ss:$4 sm:$0xff] %v877_v10  ;;  %v1276_v20 = vunpack.c.l.b16 %v1013_v15  ;;  %v1014_v21 = vpack.c.bf16 %v952_v19, %v952_v19  ;;  %v1077_v22 = vshrl.u32 %v1013_v15, 16  ;;  %v1080_v26 = vshll.u32 %v1013_v15, 16 }
 0x171   : > { %956 = vst [vmem:[#allocation1 + $0x3] ss:$4 sm:$0xff] %v914_v13  ;;  %v2200_v28 = vrot.slane %v1013_v15, 9 }
 0x172   : > { %957 = vst [vmem:[#allocation1 + $0x20] ss:$4 sm:$0xff] %v915_v14  ;;  %v1283_v27 = vpack.c.b16 %v1276_v20, %v1275_v17  ;;  %v1401_v29 = vrot.slane %v1014_v21, 5  ;;  %v1079_v30 = vrot.slane %v1077_v22, 4  ;;  %v1082_v32 = vrot.slane %v1080_v26, 5 }
 0x173   : > { %v1086_v33 = vshll.u32 %v1014_v21, 16 }
 0x174   : > { %1347 = vmatmul.bf16.vlgmr.msra.gmra.mxu2 %v1283_v27  ;;  %v1402_v34 = vsel %vm2991_vm10, %v2200_v28, %v1401_v29  ;;  %v1083_v39 = vor.u32 %v1082_v32, %v1079_v30 }
 0x175   : > { %v880_v36 = vpop.f32.mrf.mxu0  ;;  %v1428_v38 = vunpack.c.l.b16 %v1402_v34  ;;  %v1088_v45 = vrot.slane %v1086_v33, 5 }
 0x176   : > { %v917_v42 = vrot.slane %v880_v36, 2  ;;  %v1084_v44 = vrot.slane %v1083_v39, 4  ;;  %v918_v47 = vrot.slane %v880_v36, 4  ;;  %v919_v48 = vrot.slane %v880_v36, 6 }
 0x177   : > { %v1435_v43 = vpack.c.b16 %v1428_v38, %v1427_v37 }
 0x178   : > { %v958_v46 = vld.sshfl [vmem:[#allocation1] sm:$0xff pattern:$0x73625140]  ;;  %v1089_v49 = vsel %vm2999_vm12, %v1084_v44, %v1088_v45 }
 0x179   : > { %960 = vst [vmem:[#allocation1] ss:$4 sm:$0xff] %v916_v40  ;;  %1499 = vmatmul.bf16.vlgmr.msra.gmra.mxu3 %v1435_v43  ;;  %v1015_v50 = vpack.c.bf16 %v958_v46, %v958_v46  ;;  %v1175_v52 = vunpack.c.l.b16 %v1089_v49  ;;  %v959_v53 = vld.sshfl [vmem:[#allocation1 + $0x20] sm:$0xff pattern:$0x73625140] }
 0x17a   : > { %961 = vst [vmem:[#allocation1 + $0x1] ss:$4 sm:$0xff] %v880_v36  ;;  %v1016_v58 = vpack.c.bf16 %v959_v53, %v959_v53 }
 0x17b   : > { %962 = vst [vmem:[#allocation1 + $0x2] ss:$4 sm:$0xff] %v917_v42  ;;  %v1182_v54 = vpack.c.b16 %v1175_v52, %v1174_v51  ;;  %v1091_v55 = vshrl.u32 %v1015_v50, 16  ;;  %v1094_v56 = vshll.u32 %v1015_v50, 16  ;;  %v2201_v63 = vrot.slane %v1015_v50, 9 }
 0x17c   : > { %963 = vst [vmem:[#allocation1 + $0x3] ss:$4 sm:$0xff] %v918_v47  ;;  %v1405_v0 = vrot.slane %v1016_v58, 5  ;;  %v1277_v8 = vunpack.c.l.b16 %v1015_v50  ;;  %v1100_v11 = vshll.u32 %v1016_v58, 16 }
 0x17d   : > { %v882_v57 = vpop.f32.mrf.mxu0  ;;  %964 = vst [vmem:[#allocation1 + $0x20] ss:$4 sm:$0xff] %v919_v48  ;;  %1246 = vmatmul.bf16.vlgmr.msra.gmra.mxu1 %v1182_v54  ;;  %v1093_v59 = vrot.slane %v1091_v55, 4  ;;  %v1096_v60 = vrot.slane %v1094_v56, 5 }
 0x17e   : > { %v920_v61 = vrot.slane %v882_v57, 2  ;;  %v921_v62 = vrot.slane %v882_v57, 4  ;;  %v922_v2 = vrot.slane %v882_v57, 6  ;;  %v1406_v10 = vsel %vm2991_vm10, %v2201_v63, %v1405_v0 }
 0x17f   : > { %v1097_v5 = vor.u32 %v1096_v60, %v1093_v59  ;;  %v1429_v22 = vunpack.c.l.b16 %v1406_v10  ;;  %v1102_v26 = vrot.slane %v1100_v11, 5 }
 0x181   : > { %v1098_v17 = vrot.slane %v1097_v5, 4 }
 0x183   : > { %v965_v1 = vld.sshfl [vmem:[#allocation1] sm:$0xff pattern:$0x73625140]  ;;  %v1103_v33 = vsel %vm2999_vm12, %v1098_v17, %v1102_v26 }
 0x184   : > { %967 = vst [vmem:[#allocation1] ss:$4 sm:$0xff] %v882_v57  ;;  %v966_v3 = vld.sshfl [vmem:[#allocation1 + $0x20] sm:$0xff pattern:$0x73625140]  ;;  %v1017_v4 = vpack.c.bf16 %v965_v1, %v965_v1  ;;  %v1176_v39 = vunpack.c.l.b16 %v1103_v33 }
 0x185   : > { %968 = vst [vmem:[#allocation1 + $0x1] ss:$4 sm:$0xff] %v920_v61  ;;  %v885_v6 = vpop.f32.mrf.mxu0  ;;  %v1018_v7 = vpack.c.bf16 %v966_v3, %v966_v3 }
 0x186   : > { %969 = vst [vmem:[#allocation1 + $0x2] ss:$4 sm:$0xff] %v921_v62  ;;  %v1278_v9 = vunpack.c.l.b16 %v1017_v4  ;;  %v2202_v12 = vrot.slane %v1017_v4, 9  ;;  %v1105_v14 = vshrl.u32 %v1017_v4, 16  ;;  %v1108_v15 = vshll.u32 %v1017_v4, 16 }
 0x187   : > { %970 = vst [vmem:[#allocation1 + $0x3] ss:$4 sm:$0xff] %v922_v2  ;;  %v1409_v13 = vrot.slane %v1018_v7, 5  ;;  %v1114_v23 = vshll.u32 %v1018_v7, 16  ;;  %v923_v25 = vrot.slane %v885_v6, 2  ;;  %v924_v28 = vrot.slane %v885_v6, 4 }
 0x188   : > { %971 = vst [vmem:[#allocation1 + $0x20] ss:$4 sm:$0xff] %v885_v6  ;;  %v1284_v19 = vpack.c.b16 %v1278_v9, %v1277_v8  ;;  %v1107_v20 = vrot.slane %v1105_v14, 4  ;;  %v1110_v21 = vrot.slane %v1108_v15, 5  ;;  %v925_v30 = vrot.slane %v885_v6, 6 }
 0x189   : > { %v1410_v18 = vsel %vm2991_vm10, %v2202_v12, %v1409_v13  ;;  %v1116_v35 = vrot.slane %v1114_v23, 5 }
 0x18a   : > { %1352 = vmatmul.bf16.gmra.mxu2 %v1284_v19  ;;  %v1430_v24 = vunpack.c.l.b16 %v1410_v18  ;;  %v1111_v27 = vor.u32 %v1110_v21, %v1107_v20 }
 0x18c   : > { %v1436_v29 = vpack.c.b16 %v1430_v24, %v1429_v22  ;;  %v1112_v34 = vrot.slane %v1111_v27, 4 }
 0x18d   : > { %v887_v32 = vpop.f32.mrf.mxu0 }
 0x18e   : > { %v972_v36 = vld.sshfl [vmem:[#allocation1] sm:$0xff pattern:$0x73625140]  ;;  %1504 = vmatmul.bf16.gmra.mxu3 %v1436_v29  ;;  %v926_v37 = vrot.slane %v887_v32, 2  ;;  %v1117_v38 = vsel %vm2999_vm12, %v1112_v34, %v1116_v35  ;;  %v927_v48 = vrot.slane %v887_v32, 4  ;;  %v928_v49 = vrot.slane %v887_v32, 6 }
 0x18f   : > { %974 = vst [vmem:[#allocation1] ss:$4 sm:$0xff] %v923_v25  ;;  %v1177_v40 = vunpack.c.l.b16 %v1117_v38  ;;  %v1019_v41 = vpack.c.bf16 %v972_v36, %v972_v36  ;;  %v973_v42 = vld.sshfl [vmem:[#allocation1 + $0x20] sm:$0xff pattern:$0x73625140] }
 0x190   : > { %975 = vst [vmem:[#allocation1 + $0x1] ss:$4 sm:$0xff] %v924_v28  ;;  %v1020_v44 = vpack.c.bf16 %v973_v42, %v973_v42 }
 0x191   : > { %976 = vst [vmem:[#allocation1 + $0x2] ss:$4 sm:$0xff] %v925_v30  ;;  %v1183_v43 = vpack.c.b16 %v1177_v40, %v1176_v39  ;;  %v1119_v45 = vshrl.u32 %v1019_v41, 16  ;;  %v1122_v46 = vshll.u32 %v1019_v41, 16  ;;  %v2203_v60 = vrot.slane %v1019_v41, 9 }
 0x192   : > { %977 = vst [vmem:[#allocation1 + $0x3] ss:$4 sm:$0xff] %v887_v32  ;;  %v1413_v50 = vrot.slane %v1020_v44, 5  ;;  %v1128_v51 = vshll.u32 %v1020_v44, 16  ;;  %v1279_v61 = vunpack.c.l.b16 %v1019_v41 }
 0x193   : > { %978 = vst [vmem:[#allocation1 + $0x20] ss:$4 sm:$0xff] %v926_v37  ;;  %1251 = vmatmul.bf16.gmra.mxu1 %v1183_v43  ;;  %v1121_v54 = vrot.slane %v1119_v45, 4  ;;  %v1124_v55 = vrot.slane %v1122_v46, 5 }
 0x194   : > { %v1414_v1 = vsel %vm2991_vm10, %v2203_v60, %v1413_v50  ;;  %v1130_v6 = vrot.slane %v1128_v51, 5 }
 0x195   : > { %v890_v47 = vpop.f32.mrf.mxu0  ;;  %v1125_v4 = vor.u32 %v1124_v55, %v1121_v54  ;;  %v1431_v12 = vunpack.c.l.b16 %v1414_v1 }
 0x196   : > { %v929_v52 = vrot.slane %v890_v47, 2  ;;  %v930_v56 = vrot.slane %v890_v47, 4  ;;  %v931_v19 = vrot.slane %v890_v47, 6 }
 0x197   : > { %v1126_v14 = vrot.slane %v1125_v4, 4 }
 0x199   : > { %v979_v53 = vld.sshfl [vmem:[#allocation1] sm:$0xff pattern:$0x73625140]  ;;  %v1131_v20 = vsel %vm2999_vm12, %v1126_v14, %v1130_v6 }
 0x19a   : > { %v1021_v57 = vpack.c.bf16 %v979_v53, %v979_v53  ;;  %981 = vst [vmem:[#allocation1] ss:$4 sm:$0xff] %v927_v48  ;;  %v980_v58 = vld.sshfl [vmem:[#allocation1 + $0x20] sm:$0xff pattern:$0x73625140]  ;;  %v1178_v28 = vunpack.c.l.b16 %v1131_v20 }
 0x19b   : > { %982 = vst [vmem:[#allocation1 + $0x1] ss:$4 sm:$0xff] %v928_v49  ;;  %v1022_v59 = vpack.c.bf16 %v980_v58, %v980_v58 }
 0x19c   : > { %v1280_v62 = vunpack.c.l.b16 %v1021_v57  ;;  %983 = vst [vmem:[#allocation1 + $0x2] ss:$4 sm:$0xff] %v890_v47  ;;  %v1133_v63 = vshrl.u32 %v1021_v57, 16  ;;  %v1136_v0 = vshll.u32 %v1021_v57, 16  ;;  %v2204_v2 = vrot.slane %v1021_v57, 9 }
 0x19d   : > { %984 = vst [vmem:[#allocation1 + $0x3] ss:$4 sm:$0xff] %v929_v52  ;;  %v1417_v3 = vrot.slane %v1022_v59, 5  ;;  %v1142_v10 = vshll.u32 %v1022_v59, 16  ;;  %v892_v11 = vpop.f32.mrf.mxu0 }
 0x19e   : > { %v1285_v5 = vpack.c.b16 %v1280_v62, %v1279_v61  ;;  %985 = vst [vmem:[#allocation1 + $0x20] ss:$4 sm:$0xff] %v930_v56  ;;  %v1135_v8 = vrot.slane %v1133_v63, 4  ;;  %v1138_v9 = vrot.slane %v1136_v0, 5  ;;  %v932_v18 = vrot.slane %v892_v11, 2 }
 0x19f   : > { %v1418_v7 = vsel %vm2991_vm10, %v2204_v2, %v1417_v3  ;;  %v1144_v23 = vrot.slane %v1142_v10, 5  ;;  %v933_v22 = vrot.slane %v892_v11, 4  ;;  %v934_v25 = vrot.slane %v892_v11, 6  ;;  %v2387_v10 = vld [vmem:[#allocation8 + $0x74] sm:$0xf0] }
 0x1a0   : > { %1357 = vmatmul.bf16.gmra.mxu2 %v1285_v5  ;;  %v1432_v13 = vunpack.c.l.b16 %v1418_v7  ;;  %v1139_v15 = vor.u32 %v1138_v9, %v1135_v8  ;;  %v2297_v9 = vld [vmem:[#allocation8 + $0x70] sm:$0xf] }
 0x1a1   : > { %v2298_v14 = vor.u32 %v2387_v10, %v2297_v9 }
 0x1a2   : > { %v1437_v17 = vpack.c.b16 %v1432_v13, %v1431_v12  ;;  %v1140_v21 = vrot.slane %v1139_v15, 4  ;;  %v2385_v15 = vld [vmem:[#allocation8 + $0x64] sm:$0xf0] }
 0x1a3   : > { %1814 = vmatpush.bf16.msrb.mxu1 %v2298_v14 }
 0x1a4   : > { %1509 = vmatmul.bf16.gmra.mxu3 %v1437_v17  ;;  %v986_v24 = vld.sshfl [vmem:[#allocation1] sm:$0xff pattern:$0x73625140]  ;;  %v1145_v26 = vsel %vm2999_vm12, %v1140_v21, %v1144_v23  ;;  %v2281_v23 = vld [vmem:[#allocation8 + $0x50] sm:$0xf] }
 0x1a5   : > { %988 = vst [vmem:[#allocation1] ss:$4 sm:$0xff] %v931_v19  ;;  %v1023_v27 = vpack.c.bf16 %v986_v24, %v986_v24  ;;  %v1179_v29 = vunpack.c.l.b16 %v1145_v26  ;;  %v987_v30 = vld.sshfl [vmem:[#allocation1 + $0x20] sm:$0xff pattern:$0x73625140] }
 0x1a6   : > { %989 = vst [vmem:[#allocation1 + $0x1] ss:$4 sm:$0xff] %v892_v11  ;;  %v1024_v35 = vpack.c.bf16 %v987_v30, %v987_v30  ;;  %v2289_v11 = vld [vmem:[#allocation8 + $0x60] sm:$0xf] }
 0x1a7   : > { %990 = vst [vmem:[#allocation1 + $0x2] ss:$4 sm:$0xff] %v932_v18  ;;  %v1147_v32 = vshrl.u32 %v1023_v27, 16  ;;  %v1150_v33 = vshll.u32 %v1023_v27, 16  ;;  %v1184_v34 = vpack.c.b16 %v1179_v29, %v1178_v28  ;;  %v2205_v39 = vrot.slane %v1023_v27, 9 }
 0x1a8   : > { %991 = vst [vmem:[#allocation1 + $0x3] ss:$4 sm:$0xff] %v933_v22  ;;  %v1421_v40 = vrot.slane %v1024_v35, 5  ;;  %v1281_v44 = vunpack.c.l.b16 %v1023_v27  ;;  %v1156_v46 = vshll.u32 %v1024_v35, 16  ;;  %v2290_v17 = vor.u32 %v2385_v15, %v2289_v11  ;;  %v2383_v22 = vld [vmem:[#allocation8 + $0x54] sm:$0xf0] }
 0x1a9   : > { %992 = vst [vmem:[#allocation1 + $0x20] ss:$4 sm:$0xff] %v934_v25  ;;  %1256 = vmatmul.bf16.gmra.mxu1 %v1184_v34  ;;  %v1149_v36 = vrot.slane %v1147_v32, 4  ;;  %v1152_v37 = vrot.slane %v1150_v33, 5  ;;  %v2282_v24 = vor.u32 %v2383_v22, %v2281_v23  ;;  %v2386_v33 = vld [vmem:[#allocation8 + $0x74] sm:$0xf] }
 0x1aa   : > { %v1422_v51 = vsel %vm2991_vm10, %v2205_v39, %v1421_v40  ;;  %v1158_v61 = vrot.slane %v1156_v46, 5  ;;  %1815 = vmatpush.bf16.msrb.mxu1 %v2290_v17  ;;  %v2299_v34 = vld [vmem:[#allocation8 + $0x78] sm:$0xf0]  ;;  %v2273_v35 = vld [vmem:[#allocation8 + $0x40] sm:$0xf] }
 0x1ab   : > { %v1153_v41 = vor.u32 %v1152_v37, %v1149_v36  ;;  %v1433_v59 = vunpack.c.l.b16 %v1422_v51  ;;  %v2381_v39 = vld [vmem:[#allocation8 + $0x44] sm:$0xf0]  ;;  %v2382_v15 = vld [vmem:[#allocation8 + $0x54] sm:$0xf]  ;;  %v2257_v22 = vld [vmem:[#allocation8 + $0x20] sm:$0xf] }
 0x1ad   : > { %v1154_v53 = vrot.slane %v1153_v41, 4 }
 0x1ae   : > { %1816 = vmatpush.bf16.msrb.mxu1 %v2282_v24 }
 0x1af   : > { %v993_v38 = vld.sshfl [vmem:[#allocation1] sm:$0xff pattern:$0x73625140]  ;;  %v1159_v0 = vsel %vm2999_vm12, %v1154_v53, %v1158_v61  ;;  %v2384_v61 = vld [vmem:[#allocation8 + $0x64] sm:$0xf] }
 0x1b0   : > { %v1025_v42 = vpack.c.bf16 %v993_v38, %v993_v38  ;;  %v994_v43 = vld.sshfl [vmem:[#allocation1 + $0x20] sm:$0xff pattern:$0x73625140]  ;;  %v1180_v4 = vunpack.c.l.b16 %v1159_v0  ;;  %v2302_v38 = vor.u32 %v2386_v33, %v2299_v34  ;;  %v2380_v34 = vld [vmem:[#allocation8 + $0x44] sm:$0xf] }
 0x1b1   : > { %v1026_v45 = vpack.c.bf16 %v994_v43, %v994_v43 }
 0x1b2   : > { %v1282_v47 = vunpack.c.l.b16 %v1025_v42  ;;  %v2206_v48 = vrot.slane %v1025_v42, 9  ;;  %v1161_v49 = vshrl.u32 %v1025_v42, 16  ;;  %v1164_v50 = vshll.u32 %v1025_v42, 16  ;;  %1827 = vmatpush.bf16.msrb.mxu2 %v2302_v38 }
 0x1b3   : > { %v1425_v52 = vrot.slane %v1026_v45, 5  ;;  %v1170_v57 = vshll.u32 %v1026_v45, 16  ;;  %v2274_v42 = vor.u32 %v2381_v39, %v2273_v35  ;;  %v2275_v35 = vld [vmem:[#allocation8 + $0x48] sm:$0xf0]  ;;  %v2375_v39 = vld [vmem:[#allocation8 + $0x14] sm:$0xf0] }
 0x1b4   : > { %v1286_v54 = vpack.c.b16 %v1282_v47, %v1281_v44  ;;  %v1163_v55 = vrot.slane %v1161_v49, 4  ;;  %v1166_v56 = vrot.slane %v1164_v50, 5 }
 0x1b5   : > { %v1426_v58 = vsel %vm2991_vm10, %v2206_v48, %v1425_v52  ;;  %v1172_v2 = vrot.slane %v1170_v57, 5  ;;  %1817 = vmatpush.bf16.msrb.mxu1 %v2274_v42 }
 0x1b6   : > { %1362 = vmatmul.bf16.gmra.mxu2 %v1286_v54  ;;  %v1434_v60 = vunpack.c.l.b16 %v1426_v58  ;;  %v1167_v62 = vor.u32 %v1166_v56, %v1163_v55 }
 0x1b8   : > { %v1438_v63 = vpack.c.b16 %v1434_v60, %v1433_v59  ;;  %v1168_v1 = vrot.slane %v1167_v62, 4  ;;  %v2291_v62 = vld [vmem:[#allocation8 + $0x68] sm:$0xf0] }
 0x1ba   : > { %1514 = vmatmul.bf16.gmra.mxu3 %v1438_v63  ;;  %v1173_v3 = vsel %vm2999_vm12, %v1168_v1, %v1172_v2  ;;  %v2265_v63 = vld [vmem:[#allocation8 + $0x30] sm:$0xf]  ;;  %v2294_v2 = vor.u32 %v2384_v61, %v2291_v62  ;;  %v2259_v61 = vld [vmem:[#allocation8 + $0x28] sm:$0xf0] }
 0x1bb   : > { %v1181_v5 = vunpack.c.l.b16 %v1173_v3  ;;  %v2379_v3 = vld [vmem:[#allocation8 + $0x34] sm:$0xf0] }
 0x1bc   : > { %1828 = vmatpush.bf16.msrb.mxu2 %v2294_v2 }
 0x1bd   : > { %v1185_v6 = vpack.c.b16 %v1181_v5, %v1180_v4 }
 0x1bf   : > { %1261 = vmatmul.bf16.gmra.mxu1 %v1185_v6 }
 0x1f7   : > { %v1348_v16 = vpop.f32.mrf.mxu2 }
 0x1fa   : > { %v1247_v8 = vpop.f32.mrf.mxu1 }
 0x1fb   : > { %v1349_v21 = vadd.f32 %v1348_v16, %v1247_v8 }
 0x1fc   : > { %v1500_v7 = vpop.f32.mrf.mxu3 }
 0x1fd   : > { %v3033_v25 = vadd.f32 %v1500_v7, %v1349_v21  ;;  %v2266_v7 = vor.u32 %v2379_v3, %v2265_v63 }
 0x1ff   : > { %v1350_v12 = vpop.f32.mrf.mxu2  ;;  %v1529_v29 = vsel %vm1528_vm13, %v3033_v25, -inf  ;;  %v1586_v30 = vsel %vm1585_vm14, %v3033_v25, -inf  ;;  %1818 = vmatpush.bf16.msrb.mxu1 %v2266_v7 }
 0x200   : > { %v1530_v40 = vrot.slane %v1529_v29, 4  ;;  %v1587_v41 = vrot.slane %v1586_v30, 4 }
 0x202   : > { %v1249_v19 = vpop.f32.mrf.mxu1  ;;  %v1531_v47 = vmax.f32 %v1529_v29, %v1530_v40  ;;  %v1588_v49 = vmax.f32 %v1586_v30, %v1587_v41  ;;  %v2377_v29 = vld [vmem:[#allocation8 + $0x24] sm:$0xf0]  ;;  %v2378_v40 = vld [vmem:[#allocation8 + $0x34] sm:$0xf] }
 0x203   : > { %v1351_v26 = vadd.f32 %v1350_v12, %v1249_v19  ;;  %v2283_v19 = vld [vmem:[#allocation8 + $0x58] sm:$0xf0]  ;;  %v2258_v33 = vor.u32 %v2377_v29, %v2257_v22 }
 0x204   : > { %v1502_v13 = vpop.f32.mrf.mxu3  ;;  %v1532_v55 = vrot.slane %v1531_v47, 2  ;;  %v1589_v56 = vrot.slane %v1588_v49, 2 }
 0x205   : > { %v3039_v36 = vadd.f32 %v1502_v13, %v1351_v26  ;;  %1819 = vmatpush.bf16.msrb.mxu1 %v2258_v33 }
 0x206   : > { %v3051_v0 = vmax.f32 %v1531_v47, %v1532_v55  ;;  %v3053_v4 = vmax.f32 %v1588_v49, %v1589_v56  ;;  %v2373_v49 = vld [vmem:[#allocation8 + $0x4] sm:$0xf0] }
 0x207   : > { %v1536_v43 = vsel %vm1528_vm13, %v3039_v36, -inf  ;;  %v1593_v44 = vsel %vm1585_vm14, %v3039_v36, -inf  ;;  %v1686_v21 = vrot.slane %v3039_v36, 7  ;;  %v2267_v36 = vld [vmem:[#allocation8 + $0x38] sm:$0xf0] }
 0x208   : > { %v1537_v51 = vrot.slane %v1536_v43, 4  ;;  %v1594_v52 = vrot.slane %v1593_v44, 4 }
 0x209   : > { %v1687_v55 = vsel %vm612_vm3, %v1686_v21, %v3033_v25  ;;  %v2395_v21 = vld [vmem:[#allocation10 + $0x38] sm:$0xff] }
 0x20a   : > { %v1538_v57 = vmax.f32 %v1536_v43, %v1537_v51  ;;  %v1595_v58 = vmax.f32 %v1593_v44, %v1594_v52  ;;  %v2278_v43 = vor.u32 %v2380_v34, %v2275_v35  ;;  %1933 = vmatpush.bf16.msrb.mxu3 %v2395_v21 }
 0x20c   : > { %v1539_v8 = vrot.slane %v1538_v57, 2  ;;  %v1596_v9 = vrot.slane %v1595_v58, 2 }
 0x20d   : > { %v1353_v31 = vpop.f32.mrf.mxu2 }
 0x20e   : > { %v1540_v30 = vmax.f32 %v1538_v57, %v1539_v8 }
 0x210   : > { %v1252_v18 = vpop.f32.mrf.mxu1 }
 0x211   : > { %v1505_v20 = vpop.f32.mrf.mxu3  ;;  %v1354_v37 = vadd.f32 %v1353_v31, %v1252_v18  ;;  %v2286_v31 = vor.u32 %v2382_v15, %v2283_v19  ;;  %v1534_v18 = vrot.slane %v3051_v0, 1 }
 0x213   : > { %v3045_v45 = vadd.f32 %v1505_v20, %v1354_v37  ;;  %v1591_v20 = vrot.slane %v3053_v4, 1  ;;  %1829 = vmatpush.bf16.msrb.mxu2 %v2286_v31  ;;  %v2249_v37 = vld [vmem:[#allocation8 + $0x10] sm:$0xf]  ;;  %v2251_v31 = vld [vmem:[#allocation8 + $0x18] sm:$0xf0] }
 0x214   : > { %v2250_v44 = vor.u32 %v2375_v39, %v2249_v37 }
 0x215   : > { %v1355_v27 = vpop.f32.mrf.mxu2  ;;  %v1543_v53 = vsel %vm1528_vm13, %v3045_v45, -inf  ;;  %v1600_v5 = vsel %vm1585_vm14, %v3045_v45, -inf }
 0x216   : > { %v1544_v59 = vrot.slane %v1543_v53, 4  ;;  %v1601_v17 = vrot.slane %v1600_v5, 4  ;;  %1820 = vmatpush.bf16.msrb.mxu1 %v2250_v44 }
 0x217   : > { %1830 = vmatpush.bf16.msrb.mxu2 %v2278_v43 }
 0x218   : > { %v1254_v28 = vpop.f32.mrf.mxu1  ;;  %v1545_v10 = vmax.f32 %v1543_v53, %v1544_v59  ;;  %v1602_v38 = vmax.f32 %v1600_v5, %v1601_v17  ;;  %v2376_v59 = vld [vmem:[#allocation8 + $0x24] sm:$0xf]  ;;  %v1535_v5 = vmax.f32 %v3051_v0, %v1534_v18  ;;  %v2374_v17 = vld [vmem:[#allocation8 + $0x14] sm:$0xf]  ;;  %v1688_v0 = vrot.slane %v3045_v45, 6 }
 0x219   : > { %v1507_v32 = vpop.f32.mrf.mxu3  ;;  %v1356_v54 = vadd.f32 %v1355_v27, %v1254_v28  ;;  %v2254_v33 = vor.u32 %v2374_v17, %v2251_v31 }
 0x21a   : > { %v1546_v24 = vrot.slane %v1545_v10, 2  ;;  %v1603_v62 = vrot.slane %v1602_v38, 2 }
 0x21b   : > { %v3049_v60 = vadd.f32 %v1507_v32, %v1356_v54  ;;  %v1597_v32 = vmax.f32 %v1595_v58, %v1596_v9  ;;  %v2270_v54 = vor.u32 %v2378_v40, %v2267_v36 }
 0x21c   : > { %v1604_v22 = vmax.f32 %v1602_v38, %v1603_v62  ;;  %v2372_v38 = vld [vmem:[#allocation8 + $0x4] sm:$0xf] }
 0x21d   : > { %v1550_v12 = vsel %vm1528_vm13, %v3049_v60, -inf  ;;  %v1607_v13 = vsel %vm1585_vm14, %v3049_v60, -inf  ;;  %v1598_v51 = vrot.slane %v1597_v32, 1  ;;  %1831 = vmatpush.bf16.msrb.mxu2 %v2270_v54 }
 0x21e   : > { %v1551_v26 = vrot.slane %v1550_v12, 4  ;;  %v1608_v27 = vrot.slane %v1607_v13, 4 }
 0x21f   : > { %v1599_v25 = vmax.f32 %v1597_v32, %v1598_v51 }
 0x220   : > { %v1552_v52 = vmax.f32 %v1550_v12, %v1551_v26  ;;  %v1609_v56 = vmax.f32 %v1607_v13, %v1608_v27  ;;  %v2262_v12 = vor.u32 %v2376_v59, %v2259_v61  ;;  %v2394_v27 = vld [vmem:[#allocation10 + $0x30] sm:$0xff] }
 0x221   : > { %1934 = vmatpush.bf16.msrb.mxu3 %v2394_v27 }
 0x222   : > { %v1610_v13 = vrot.slane %v1609_v56, 2  ;;  %1832 = vmatpush.bf16.msrb.mxu2 %v2262_v12 }
 0x223   : > { %v1358_v46 = vpop.f32.mrf.mxu2 }
 0x224   : > { %v1611_v34 = vmax.f32 %v1609_v56, %v1610_v13 }
 0x226   : > { %v1257_v48 = vpop.f32.mrf.mxu1  ;;  %1833 = vmatpush.bf16.msrb.mxu2 %v2254_v33  ;;  %v1612_v56 = vrot.slane %v1611_v34, 1 }
 0x227   : > { %v1510_v50 = vpop.f32.mrf.mxu3  ;;  %v1359_v6 = vadd.f32 %v1358_v46, %v1257_v48  ;;  %v2241_v48 = vld [vmem:[#allocation8] sm:$0xf] }
 0x228   : > { %v2242_v3 = vor.u32 %v2373_v49, %v2241_v48  ;;  %v2393_v49 = vld [vmem:[#allocation10 + $0x28] sm:$0xff] }
 0x229   : > { %v3064_v23 = vadd.f32 %v1510_v50, %v1359_v6  ;;  %v1541_v50 = vrot.slane %v1540_v30, 1  ;;  %v1592_v6 = vmax.f32 %v3053_v4, %v1591_v20  ;;  %v1690_v20 = vrot.slane %v3049_v60, 5  ;;  %v2243_v60 = vld [vmem:[#allocation8 + $0x8] sm:$0xf0]  ;;  %1935 = vmatpush.bf16.msrb.mxu3 %v2393_v49 }
 0x22a   : > { %1821 = vmatpush.bf16.msrb.mxu1 %v2242_v3  ;;  %v2246_v54 = vor.u32 %v2372_v38, %v2243_v60 }
 0x22b   : > { %v1360_v16 = vpop.f32.mrf.mxu2  ;;  %v1557_v41 = vsel %vm1528_vm13, %v3064_v23, -inf  ;;  %v1614_v42 = vsel %vm1585_vm14, %v3064_v23, -inf  ;;  %v1542_v9 = vmax.f32 %v1540_v30, %v1541_v50  ;;  %v1670_v44 = vsel %vm612_vm3, %v1599_v25, %v1592_v6  ;;  %v2392_v6 = vld [vmem:[#allocation10 + $0x20] sm:$0xff] }
 0x22c   : > { %v1558_v57 = vrot.slane %v1557_v41, 4  ;;  %v1615_v58 = vrot.slane %v1614_v42, 4  ;;  %1834 = vmatpush.bf16.msrb.mxu2 %v2246_v54  ;;  %v1692_v21 = vrot.slane %v3064_v23, 4 }
 0x22d   : > { %v1650_v45 = vsel %vm612_vm3, %v1542_v9, %v1535_v5  ;;  %vm1655_vm3 = vcmask 1045509   ;;  %1936 = vmatpush.bf16.msrb.mxu3 %v2392_v6  ;;  %v2388_v6 = vld [vmem:[#allocation10] sm:$0xff] }
 0x22e   : > { %v1259_v1 = vpop.f32.mrf.mxu1  ;;  %v1616_v15 = vmax.f32 %v1614_v42, %v1615_v58 }
 0x22f   : > { %v1361_v11 = vadd.f32 %v1360_v16, %v1259_v1  ;;  %v1512_v14 = vpop.f32.mrf.mxu3  ;;  %v1547_v16 = vmax.f32 %v1545_v10, %v1546_v24 }
 0x230   : > { %v1617_v37 = vrot.slane %v1616_v15, 2 }
 0x231   : > { %v3066_v28 = vadd.f32 %v1512_v14, %v1361_v11  ;;  %v1553_v11 = vrot.slane %v1552_v52, 2  ;;  %v1559_v14 = vmax.f32 %v1557_v41, %v1558_v57  ;;  %v1548_v18 = vrot.slane %v1547_v16, 1 }
 0x232   : > { %v1618_v58 = vmax.f32 %v1616_v15, %v1617_v37 }
 0x233   : > { %v1564_v46 = vsel %vm1528_vm13, %v3066_v28, -inf  ;;  %v1621_v47 = vsel %vm1585_vm14, %v3066_v28, -inf  ;;  %v1554_v29 = vmax.f32 %v1552_v52, %v1553_v11  ;;  %v1560_v35 = vrot.slane %v1559_v14, 2 }
 0x234   : > { %v1565_v63 = vrot.slane %v1564_v46, 4  ;;  %v1622_v1 = vrot.slane %v1621_v47, 4  ;;  %v1549_v61 = vmax.f32 %v1547_v16, %v1548_v18  ;;  %v1613_v16 = vmax.f32 %v1611_v34, %v1612_v56 }
 0x235   : > { %v1555_v50 = vrot.slane %v1554_v29, 1  ;;  %v1561_v57 = vmax.f32 %v1559_v14, %v1560_v35  ;;  %v1619_v12 = vrot.slane %v1618_v58, 1 }
 0x236   : > { %v1566_v4 = vmax.f32 %v1564_v46, %v1565_v63  ;;  %v1623_v10 = vmax.f32 %v1621_v47, %v1622_v1  ;;  %v1605_v46 = vrot.slane %v1604_v22, 1  ;;  %v1689_v47 = vsel %vm616_vm4, %v1688_v0, %v1687_v55 }
 0x237   : > { %v1691_v62 = vsel %vm620_vm5, %v1690_v20, %v1689_v47  ;;  %v1562_v11 = vrot.slane %v1561_v57, 1  ;;  %v1651_v31 = vsel %vm616_vm4, %v1549_v61, %v1650_v45  ;;  %v1620_v27 = vmax.f32 %v1618_v58, %v1619_v12  ;;  %v2494_v47 = vld [vmem:[%s3165_s3] ss:$0 sm:$0xff]  ;;  %v2391_v61 = vld [vmem:[#allocation10 + $0x18] sm:$0xff] }
 0x238   : > { %v1567_v39 = vrot.slane %v1566_v4, 2  ;;  %v1624_v40 = vrot.slane %v1623_v10, 2  ;;  %v1693_v23 = vsel %vm1653_vm15, %v1692_v21, %v1691_v62  ;;  %v1694_v45 = vrot.slane %v3066_v28, 3  ;;  %v1728_v58 = vld [vmem:[%s3167_s5] sm:$0x3]  ;;  %1937 = vmatpush.bf16.msrb.mxu3 %v2391_v61 }
 0x239   : > { %v1363_v53 = vpop.f32.mrf.mxu2 }
 0x23a   : > { %v1568_v63 = vmax.f32 %v1566_v4, %v1567_v39  ;;  %v1625_v55 = vmax.f32 %v1623_v10, %v1624_v40 }
 0x23c   : > { %v1262_v2 = vpop.f32.mrf.mxu1  ;;  %v1569_v13 = vrot.slane %v1568_v63, 1  ;;  %v1626_v14 = vrot.slane %v1625_v55, 1 }
 0x23d   : > { %v1364_v7 = vadd.f32 %v1363_v53, %v1262_v2  ;;  %v1515_v8 = vpop.f32.mrf.mxu3 }
 0x23f   : > { %v3080_v19 = vadd.f32 %v1515_v8, %v1364_v7  ;;  %v1606_v7 = vmax.f32 %v1604_v22, %v1605_v46  ;;  %v1556_v8 = vmax.f32 %v1554_v29, %v1555_v50  ;;  %v1570_v29 = vmax.f32 %v1568_v63, %v1569_v13 }
 0x241   : > { %v1571_v24 = vsel %vm1528_vm13, %v3080_v19, -inf  ;;  %v1628_v26 = vsel %vm1585_vm14, %v3080_v19, -inf  ;;  %v1365_v42 = vpop.f32.mrf.mxu2  ;;  %v1671_v22 = vsel %vm616_vm4, %v1606_v7, %v1670_v44  ;;  %v1652_v10 = vsel %vm620_vm5, %v1556_v8, %v1651_v31 }
 0x242   : > { %v1572_v30 = vrot.slane %v1571_v24, 4  ;;  %v1629_v32 = vrot.slane %v1628_v26, 4  ;;  %v1696_v37 = vrot.slane %v3080_v19, 2  ;;  %vm1659_vm4 = vcmask 1047559  }
 0x243   : > { %v1695_v44 = vsel %vm1655_vm3, %v1694_v45, %v1693_v23 }
 0x244   : > { %v1573_v36 = vmax.f32 %v1571_v24, %v1572_v30  ;;  %v1630_v41 = vmax.f32 %v1628_v26, %v1629_v32  ;;  %v1264_v43 = vpop.f32.mrf.mxu1  ;;  %v1672_v24 = vsel %vm620_vm5, %v1613_v16, %v1671_v22  ;;  %v1563_v26 = vmax.f32 %v1561_v57, %v1562_v11 }
 0x245   : > { %v1366_v48 = vadd.f32 %v1365_v42, %v1264_v43  ;;  %v1517_v53 = vpop.f32.mrf.mxu3  ;;  %v1627_v30 = vmax.f32 %v1625_v55, %v1626_v14  ;;  %v1673_v40 = vsel %vm1653_vm15, %v1620_v27, %v1672_v24  ;;  %vm1701_vm5 = vcmask 64512   ;;  %v2390_v55 = vld [vmem:[#allocation10 + $0x10] sm:$0xff]  ;;  %v2495_v27 = vld [vmem:[%s3169_s7] ss:$0 sm:$0xff] }
 0x246   : > { %v1574_v51 = vrot.slane %v1573_v36, 2  ;;  %v1631_v52 = vrot.slane %v1630_v41, 2  ;;  %v1654_v39 = vsel %vm1653_vm15, %v1563_v26, %v1652_v10  ;;  %1938 = vmatpush.bf16.msrb.mxu3 %v2390_v55  ;;  %v1731_v11 = vperm.slane %v1728_v58, 1 }
 0x247   : > { %v3091_v59 = vadd.f32 %v1517_v53, %v1366_v48  ;;  %v1674_v42 = vsel %vm1655_vm3, %v1627_v30, %v1673_v40  ;;  %v1697_v48 = vsel %vm1657_vm0, %v1696_v37, %v1695_v44 }
 0x248   : > { %v1575_v1 = vmax.f32 %v1573_v36, %v1574_v51  ;;  %v1632_v2 = vmax.f32 %v1630_v41, %v1631_v52  ;;  %v1656_v41 = vsel %vm1655_vm3, %v1570_v29, %v1654_v39 }
 0x249   : > { %v1578_v3 = vsel %vm1528_vm13, %v3091_v59, -inf  ;;  %v1635_v5 = vsel %vm1585_vm14, %v3091_v59, -inf  ;;  %v1698_v36 = vrot.slane %v3091_v59, 1  ;;  %v1730_v59 = vperm.slane %v1728_v58, 0 }
 0x24a   : > { %v1579_v9 = vrot.slane %v1578_v3, 4  ;;  %v1636_v25 = vrot.slane %v1635_v5, 4  ;;  %v1576_v0 = vrot.slane %v1575_v1, 1  ;;  %v1633_v4 = vrot.slane %v1632_v2, 1 }
 0x24b   : > { %v1699_v51 = vsel %vm1659_vm4, %v1698_v36, %v1697_v48 }
 0x24c   : > { %v1580_v15 = vmax.f32 %v1578_v3, %v1579_v9  ;;  %v1637_v17 = vmax.f32 %v1635_v5, %v1636_v25  ;;  %v1577_v34 = vmax.f32 %v1575_v1, %v1576_v0  ;;  %v1634_v35 = vmax.f32 %v1632_v2, %v1633_v4  ;;  %v2389_v2 = vld [vmem:[#allocation10 + $0x8] sm:$0xff] }
 0x24d   : > { %1939 = vmatpush.bf16.msrb.mxu3 %v2389_v2 }
 0x24e   : > { %v1581_v18 = vrot.slane %v1580_v15, 2  ;;  %v1638_v20 = vrot.slane %v1637_v17, 2  ;;  %v1658_v19 = vsel %vm1657_vm0, %v1577_v34, %v1656_v41  ;;  %v1675_v46 = vsel %vm1657_vm0, %v1634_v35, %v1674_v42 }
 0x250   : > { %v1582_v32 = vmax.f32 %v1580_v15, %v1581_v18  ;;  %v1639_v33 = vmax.f32 %v1637_v17, %v1638_v20 }
 0x251   : > { %1940 = vmatpush.bf16.msrb.mxu3 %v2388_v6 }
 0x252   : > { %v1583_v38 = vrot.slane %v1582_v32, 1  ;;  %v1640_v60 = vrot.slane %v1639_v33, 1 }
 0x254   : > { %v1584_v43 = vmax.f32 %v1582_v32, %v1583_v38  ;;  %v1641_v28 = vmax.f32 %v1639_v33, %v1640_v60 }
 0x256   : > { %v1660_v49 = vsel %vm1659_vm4, %v1584_v43, %v1658_v19  ;;  %v1676_v50 = vsel %vm1659_vm4, %v1641_v28, %v1675_v46 }
 0x257   : > { %v1702_v52 = vsel %vm1701_vm5, %v1660_v49, %v1676_v50 }
 0x258   : > { %v1704_v53 = vsel %vm1703_vm2, %v1702_v52, %v1699_v51 }
 0x259   : > { %v1709_v54 = vadd.f32 %v2494_v47, %v1704_v53 }
 0x25b   : > { %v1710_v56 = vmax.f32 %v1709_v54, 0.0 }
 0x25d   : > { %v1711_v57 = vpack.c.bf16 %v1710_v56, %v1710_v56 }
 0x25f   : > { %1822 = vmatmul.bf16.vlgmr.msrb.gmra.mxu1 %v1711_v57  ;;  %1835 = vmatmul.bf16.vlgmr.msrb.gmra.mxu2 %v1711_v57 }
 0x2dc   : > { %v1823_v62 = vpop.f32.mrf.mxu1 }
 0x2dd   : > { %v1824_v63 = vadd.f32 %v1823_v62, %v1730_v59 }
 0x2df   : > { %v2303_v1 = vmul.f32 -1.442695, %v1824_v63 }
 0x2e1   : > { %2496 = vpow2.f32 %v2303_v1 }
 0x2e2   : > { %v1836_v3 = vpop.f32.mrf.mxu2 }
 0x2e3   : > { %v1837_v17 = vadd.f32 %v1836_v3, %v1731_v11 }
 0x2e4   : > { %v1825_v5 = vpop.f32.mrf.mxu1 }
 0x2e5   : > { %v1859_v22 = vmax.f32 %v1837_v17, 0.0 }
 0x2e7   : > { %v2497_v7 = vpop.eup %2496 }
 0x2e8   : > { %v1843_v8 = vadd.f32 1.0, %v2497_v7 }
 0x2ea   : > { %2498 = vrcp.f32 %v1843_v8  ;;  %v1838_v9 = vpop.f32.mrf.mxu2  ;;  %v1855_v13 = vand.u32 2147483648, %v1843_v8  ;;  %v1853_v15 = vand.u32 2147483647, %v1843_v8  ;;  %vm1849_vm7 = vweird.f32 %v1843_v8 }
 0x2ec   : > { %v1856_v21 = vor.u32 1.1754944e-38, %v1855_v13  ;;  %vm1854_vm8 = vcmp.eq.f32.partialorder %v1853_v15, 8.507059e+37 }
 0x2f0   : > { %v2499_v25 = vpop.eup %2498 }
 0x2f1   : > { %v1845_v16 = vmul.f32 %v2499_v25, %v1843_v8  ;;  %vm1850_vm6 = vweird.f32 %v2499_v25 }
 0x2f2   : > { %vm1851_vm1 = vmor %vm1849_vm7, %vm1850_vm6 }
 0x2f3   : > { %v1846_v12 = vsub.f32 1.0, %v1845_v16 }
 0x2f5   : > { %v1847_v14 = vmul.f32 %v2499_v25, %v1846_v12 }
 0x2f7   : > { %v1848_v31 = vadd.f32 %v2499_v25, %v1847_v14 }
 0x2f9   : > { %v1852_v0 = vsel %vm1851_vm1, %v2499_v25, %v1848_v31 }
 0x2fa   : > { %v1857_v4 = vsel %vm1854_vm8, %v1856_v21, %v1852_v0 }
 0x2fb   : > { %v1861_v10 = vsub.f32 1.0, %v1857_v4  ;;  %v1860_v18 = vmul.f32 %v1859_v22, %v1857_v4 }
 0x2fd   : > { %v1862_v20 = vmul.f32 %v1861_v10, %v1710_v56 }
 0x2ff   : > { %v1863_v24 = vadd.f32 %v1862_v20, %v1860_v18 }
 0x301   : > { %v1864_v26 = vpack.c.bf16 %v1863_v24, %v1863_v24 }
 0x303   : > { %1941 = vmatmul.bf16.vlgmr.msrb.gmra.mxu3 %v1864_v26 }
 0x386   : > { %v1942_v29 = vpop.f32.mrf.mxu3 }
 0x387   : > { %v1943_v30 = vadd.f32 %v2495_v27, %v1942_v29 }
 0x389   : > { %1946 = vst [vmem:[%s388_s17] sm:$0xff] %v1943_v30 }
 0x38a   : > { %2677 = shalt.err (!%p2674_p9)
}
 0x38b   : > { %2414 = dma.vmem_to_hbm [thread:$0]  (%p2867_p4), %s1961_s10, 128, %s1963_s20, %s1948_s2  }
 0x38e   : > { %v1944_v32 = vpop.f32.mrf.mxu3 }
 0x38f PF: > { %s1974_s22 = sand.u32 1, %s2712_s27   ;;  %p3188_p10 = scmp.ge.s32.totalorder %s2724_s30, 2 }
 0x390   : > { %s1975_s26 = scalar_lea.sflag [#allocation4], %s1974_s22 }
 0x391   : > { %p2434_p13 = pnand %p3188_p10, %p2871_p6 }
 0x393   : > { %p2435_p11 = pneg %p2434_p13 }
 0x395   : > { %2707 = dma.done.wait (%p2435_p11), %s1975_s26, 128  }
 0x396   : > { %2709 = vsyncadd (%p2435_p11), %s1975_s26, 4294967168  ;;  %p23_p0 = scmp.ge.s32.totalorder %s2841_s24, 4   ;;  %s3189_s27 = smov %s2716_s28 }
 0x397   : > { %s3190_s28 = smov %s2720_s29  ;;  %s3191_s29 = smov %s2852_s9 }
 0x398   : > { %s3192_s30 = smov %s2841_s24  ;;  %25 = sbr.rel (!%p23_p0) target bundleno = 11 (0xb), region = 124 }
 0x39d   :  { %1981 = vsyncpa [#allocation3], 1 }
 0x39e   :  { %1983 = vsyncpa [#allocation3 + $0x1], 1 }
 0x39f   :  { %1984 = vsyncpa [#allocation6], 1 }
 0x3a0   :  { %1985 = vsyncpa [#allocation9], 1 }
 0x3a1   :  { %1986 = vsyncpa [#allocation4], 1 }
 0x3a2   :  { %1988 = vsyncpa [#allocation4 + $0x1], 1 }

</bundles_post_ra>
